<compile_context>
chip_gen: v5e
topology: v5e:2x2
jax: 0.10.0
libtpu: 0.0.40
codegen_flags: <defaults>
</compile_context>

<pallas_src>
import functools
import math

import jax
import jax.numpy as jnp
from jax.experimental import pallas as pl
from jax.experimental.pallas import tpu as pltpu


# ----------------------------------------------------------------------------
# Kernel
# ----------------------------------------------------------------------------
def _mha_relpos_kernel(q_ref, k_ref, v_ref, *rest, num_heads, d_k, width,
                       left_to_right, k_tile, has_mask):
    """One (batch, query-tile) grid step.

    q_ref:        (TQ, D)            bf16 query rows of this tile
    k_ref/v_ref:  (S,  D)            bf16 full key/value rows of this batch
    mask_ref:     (nK, 1|TQ, TK)     int32 (1 = attend, 0 = masked), optional
    wq..wo:       (D, D)             bf16 (torch Linear layout: [out, in])
    bq..bo:       (1, D)             f32
    rel_ref:      (H, width+1, d_k)  bf16
    out_ref:      (TQ, D)            f32
    scratch: kh/vh (H,S,dk) bf16 cache, s_sc (H,TQ,TK) f32 scores,
             m/l (H,TQ,1) f32, acc (H,TQ,dk) f32.
    """
    if has_mask:
        mask_ref, rest = rest[0], rest[1:]
    else:
        mask_ref = None
    (wq_ref, bq_ref, wk_ref, bk_ref, wv_ref, bv_ref, wo_ref, bo_ref, rel_ref,
     out_ref, kh_sc, vh_sc, s_sc, m_sc, l_sc, acc_sc) = rest

    dn_t = (((1,), (1,)), ((), ()))           # x @ w.T (torch Linear layout)
    h, dk, tk = num_heads, d_k, k_tile
    d_model = h * dk
    tq = q_ref.shape[0]
    s = k_ref.shape[0]
    n_k = s // tk

    # ---- project K/V once per batch element ---------------------------------
    # query-tile axis is "arbitrary" (sequential) so this cache persists across
    # query tiles of the same batch element; raw K/V blocks are only re-DMA'd
    # when the batch index changes (constant index map).
    @pl.when(pl.program_id(1) == 0)
    def _project_kv():
        k = jax.lax.dot_general(k_ref[...], wk_ref[...], dn_t,
                                preferred_element_type=jnp.float32) + bk_ref[...]
        v = jax.lax.dot_general(v_ref[...], wv_ref[...], dn_t,
                                preferred_element_type=jnp.float32) + bv_ref[...]
        # cast to bf16 *before* the head relayout (halves relayout traffic);
        # relayout now happens once per batch, not once per query tile.
        kh_sc[...] = jnp.transpose(k.astype(jnp.bfloat16).reshape(s, h, dk),
                                   (1, 0, 2))
        vh_sc[...] = jnp.transpose(v.astype(jnp.bfloat16).reshape(s, h, dk),
                                   (1, 0, 2))

    # ---- project this query tile; fold 1/sqrt(dk) into q --------------------
    q = jax.lax.dot_general(q_ref[...], wq_ref[...], dn_t,
                            preferred_element_type=jnp.float32) + bq_ref[...]
    q = q * (1.0 / math.sqrt(dk))
    qh = jnp.transpose(q.astype(jnp.bfloat16).reshape(tq, h, dk), (1, 0, 2))

    # relative-position logits (H, TQ, width+1): computed once per query tile
    # (not per key tile); already carries the 1/sqrt(dk) scale via q.
    rhat = jnp.einsum('hqd,hpd->hqp', qh, rel_ref[...],
                      preferred_element_type=jnp.float32)

    # ---- online-softmax state ------------------------------------------------
    m_sc[...] = jnp.full_like(m_sc, -1e30)
    l_sc[...] = jnp.zeros_like(l_sc)
    acc_sc[...] = jnp.zeros_like(acc_sc)

    q0 = pl.program_id(1) * tq
    if left_to_right:
        band_lo, band_hi = q0 - width, q0 + tq - 1
    else:
        band_lo, band_hi = q0, q0 + tq - 1 + width

    @pl.loop(0, n_k)
    def _key_step(t):
        k0 = pl.multiple_of(t * tk, tk)
        kh = kh_sc[:, pl.ds(k0, tk), :]        # (H, TK, dk) bf16
        vh = vh_sc[:, pl.ds(k0, tk), :]

        s_sc[...] = jnp.einsum('hqd,hkd->hqk', qh, kh,
                               preferred_element_type=jnp.float32)

        # banded rel-position bias: only key tiles overlapping the diagonal
        # band pay the (width+1) compare/select passes.
        @pl.when(jnp.logical_and(k0 <= band_hi, k0 + tk - 1 >= band_lo))
        def _add_rel_bias():
            row = q0 + jax.lax.broadcasted_iota(jnp.int32, (tq, tk), 0)
            col = k0 + jax.lax.broadcasted_iota(jnp.int32, (tq, tk), 1)
            diff = (row - col) if left_to_right else (col - row)
            sc = s_sc[...]
            for off in range(width + 1):       # width is tiny (static unroll)
                p_idx = (width - off) if left_to_right else off
                sc = sc + jnp.where((diff == off)[None],
                                    rhat[:, :, p_idx][:, :, None], 0.0)
            s_sc[...] = sc

        scores = s_sc[...]                     # (H, TQ, TK) f32
        if has_mask:
            mk = mask_ref[t]                   # (1 or TQ, TK) int32
            scores = jnp.where((mk == 0)[None], -1e9, scores)

        m_prev = m_sc[...]
        m_new = jnp.maximum(m_prev, jnp.max(scores, axis=-1, keepdims=True))
        alpha = jnp.exp(m_prev - m_new)
        p = jnp.exp(scores - m_new)
        l_sc[...] = alpha * l_sc[...] + jnp.sum(p, axis=-1, keepdims=True)
        acc_sc[...] = alpha * acc_sc[...] + jnp.einsum(
            'hqk,hkd->hqd', p.astype(jnp.bfloat16), vh,
            preferred_element_type=jnp.float32)
        m_sc[...] = m_new

    # TODO(synk): attention-probability dropout (torch.nn.Dropout) not
    #             implemented — this is the eval / p=0 identity path.

    # ---- normalize, merge heads, output projection ---------------------------
    ctx = acc_sc[...] * pl.reciprocal(l_sc[...], approx=True)      # (H, TQ, dk)
    ctx = jnp.transpose(ctx.astype(jnp.bfloat16), (1, 0, 2)).reshape(tq, d_model)
    out = jax.lax.dot_general(ctx, wo_ref[...], dn_t,
                              preferred_element_type=jnp.float32) + bo_ref[...]
    out_ref[...] = out.astype(out_ref.dtype)


# ----------------------------------------------------------------------------
# Wrapper
# ----------------------------------------------------------------------------
def _pick_tile(n, candidates):
    for t in candidates:
        if n % t == 0:
            return t
    return n


def mha_relpos(query, key, value, mask, params, *, num_heads, width,
               left_to_right):
    """Forward of MultiHeadedAttentionWithRelativePositionEmbeddings (eval)."""
    b, s, d = query.shape
    assert d % num_heads == 0
    dk = d // num_heads
    # TQ >= 256 preferred (fills the 256-wide MXU M dim on v6e/v7x);
    # TK bounds the per-step score buffer independent of S (v7x 64 MiB VMEM).
    tq = _pick_tile(s, (256, 128))
    tk = _pick_tile(s, (512, 256, 128))
    n_k = s // tk

    bf16, f32 = jnp.bfloat16, jnp.float32
    wq = params["wq"].astype(bf16)
    wk = params["wk"].astype(bf16)
    wv = params["wv"].astype(bf16)
    wo = params["wo"].astype(bf16)
    rel = params["rel"].astype(bf16)                   # (H, width+1, dk)
    bq = params["bq"].reshape(1, d).astype(f32)
    bk = params["bk"].reshape(1, d).astype(f32)
    bv = params["bv"].reshape(1, d).astype(f32)
    bo = params["bo"].reshape(1, d).astype(f32)

    # ---- mask handling: no dense (B,S,S) table unless the caller provides one.
    has_mask = mask is not None
    mask_inputs, mask_specs = (), []
    mqb = 0
    if has_mask:
        mask = jnp.asarray(mask)
        assert mask.ndim == 3 and mask.shape[-1] == s
        if mask.shape[0] != b:
            mask = jnp.broadcast_to(mask, (b,) + mask.shape[1:])
        mq = mask.shape[1]
        assert mq in (1, s), "mask must be (B,1,S) key-padding or (B,S,S)"
        # (B, MQ, S) -> (B, nK, MQ, TK): key tile on a leading (dynamic) axis.
        mask_kt = mask.astype(jnp.int32).reshape(b, mq, n_k, tk).transpose(0, 2, 1, 3)
        if mq == 1:                                    # key-padding: DMA once/batch
            mqb = 1
            mask_specs = [pl.BlockSpec((None, n_k, 1, tk),
                                       lambda bi, qi: (bi, 0, 0, 0))]
        else:                                          # general mask, q-tiled
            mqb = tq
            mask_specs = [pl.BlockSpec((None, n_k, tq, tk),
                                       lambda bi, qi: (bi, 0, qi, 0))]
        mask_inputs = (mask_kt,)

    def _const_spec(*shape):
        zeros = (0,) * len(shape)
        return pl.BlockSpec(shape, lambda bi, qi, _z=zeros: _z)

    kernel = functools.partial(
        _mha_relpos_kernel, num_heads=num_heads, d_k=dk, width=width,
        left_to_right=left_to_right, k_tile=tk, has_mask=has_mask)

    # ---- VMEM budget (2x headroom, clamped) + cost estimate ------------------
    bfb, f4 = 2, 4
    vmem_est = (
        2 * tq * d * bfb                         # q tile (double-buffered)
        + 2 * 2 * s * d * bfb                    # raw k / v rows
        + 2 * tq * d * f4                        # output tile
        + 2 * (4 * d * d * bfb + 4 * d * f4 + num_heads * (width + 1) * dk * bfb)
        + 2 * s * d * bfb                        # cached K/V heads (scratch)
        + num_heads * tq * tk * f4               # score tile
        + num_heads * tq * (dk + 2) * f4         # acc / m / l
        + 2 * s * d * f4 + 4 * tq * d * f4       # f32 projection temporaries
        + (2 * n_k * mqb * tk * 4 if has_mask else 0))
    vmem_limit = int(min(max(2 * vmem_est, 32 * 1024 * 1024),
                         100 * 1024 * 1024))

    cost = pl.CostEstimate(
        flops=8 * b * s * d * d + 4 * b * s * s * d
              + 2 * b * num_heads * s * (width + 1) * dk,
        transcendentals=b * num_heads * s * s,
        bytes_accessed=3 * b * s * d * bfb + b * s * d * f4 + 4 * d * d * bfb
                       + (b * n_k * mqb * tk * 4 if has_mask else 0))

    return pl.pallas_call(
        kernel,
        out_shape=jax.ShapeDtypeStruct((b, s, d), f32),
        grid=(b, s // tq),
        in_specs=[
            pl.BlockSpec((None, tq, d), lambda bi, qi: (bi, qi, 0)),   # q tile
            pl.BlockSpec((None, s, d), lambda bi, qi: (bi, 0, 0)),     # k rows (once/batch)
            pl.BlockSpec((None, s, d), lambda bi, qi: (bi, 0, 0)),     # v rows (once/batch)
            *mask_specs,
            _const_spec(d, d), _const_spec(1, d),                      # wq, bq
            _const_spec(d, d), _const_spec(1, d),                      # wk, bk
            _const_spec(d, d), _const_spec(1, d),                      # wv, bv
            _const_spec(d, d), _const_spec(1, d),                      # wo, bo
            _const_spec(num_heads, width + 1, dk),                     # rel params
        ],
        out_specs=pl.BlockSpec((None, tq, d), lambda bi, qi: (bi, qi, 0)),
        scratch_shapes=[
            pltpu.VMEM((num_heads, s, dk), bf16),          # cached K heads
            pltpu.VMEM((num_heads, s, dk), bf16),          # cached V heads
            pltpu.VMEM((num_heads, tq, tk), f32),          # per-tile scores
            pltpu.VMEM((num_heads, tq, 1), f32),           # running max
            pltpu.VMEM((num_heads, tq, 1), f32),           # running denom
            pltpu.VMEM((num_heads, tq, dk), f32),          # running context
        ],
        compiler_params=pltpu.CompilerParams(
            dimension_semantics=("parallel", "arbitrary"),
            vmem_limit_bytes=vmem_limit),
        cost_estimate=cost,
    )(query.astype(bf16), key.astype(bf16), value.astype(bf16), *mask_inputs,
      wq, bq, wk, bk, wv, bv, wo, bo, rel)


# ----------------------------------------------------------------------------
# Pure-JAX reference (mirrors the torch module) for in-script validation
# ----------------------------------------------------------------------------
def mha_relpos_reference(query, key, value, mask, params, *, num_heads, width,
                         left_to_right):
    b, s, d = query.shape
    dk = d // num_heads

    def lin(x, w, bias):
        return jnp.einsum('bsd,od->bso', x, w) + bias

    q = lin(query, params["wq"], params["bq"]).reshape(b, s, num_heads, dk)
    k = lin(key, params["wk"], params["bk"]).reshape(b, s, num_heads, dk)
    v = lin(value, params["wv"], params["bv"]).reshape(b, s, num_heads, dk)
    q, k, v = (jnp.transpose(t, (0, 2, 1, 3)) for t in (q, k, v))   # (B,H,S,dk)

    i = jnp.arange(s)[:, None]
    j = jnp.arange(s)[None, :]
    if left_to_right:
        off = i - j
        idx = jnp.clip(width - off, 0, width)
    else:
        off = j - i
        idx = jnp.clip(off, 0, width)
    valid = (off >= 0) & (off <= width)
    rel_dense = jnp.where(valid[None, :, :, None],
                          params["rel"][:, idx, :], 0.0)            # (H,S,S,dk)

    scale = 1.0 / math.sqrt(dk)
    scores = jnp.einsum('bhqd,bhkd->bhqk', q, k) * scale
    scores = scores + jnp.einsum('bhqd,hqkd->bhqk', q, rel_dense) * scale
    if mask is not None:
        scores = jnp.where(mask[:, None] == 0, -1e9, scores)
    p = jax.nn.softmax(scores, axis=-1)
    ctx = jnp.einsum('bhqk,bhkd->bhqd', p, v)
    ctx = jnp.transpose(ctx, (0, 2, 1, 3)).reshape(b, s, d)
    return jnp.einsum('bsd,od->bso', ctx, params["wo"]) + params["bo"]


# ----------------------------------------------------------------------------
# Deterministic parameter init (torch-Linear-style)
# ----------------------------------------------------------------------------
def init_params(key, input_dim, num_heads, width):
    dk = input_dim // num_heads

    def linear(k):
        k1, k2 = jax.random.split(k)
        bound = 1.0 / math.sqrt(input_dim)
        w = jax.random.uniform(k1, (input_dim, input_dim), jnp.float32, -bound, bound)
        bias = jax.random.uniform(k2, (input_dim,), jnp.float32, -bound, bound)
        return w, bias

    kq, kk, kv, ko, kr = jax.random.split(key, 5)
    wq, bq = linear(kq)
    wk, bk = linear(kk)
    wv, bv = linear(kv)
    wo, bo = linear(ko)
    rel = jax.random.normal(kr, (num_heads, width + 1, dk), jnp.float32) / math.sqrt(dk)
    return dict(wq=wq, bq=bq, wk=wk, bk=bk, wv=wv, bv=bv, wo=wo, bo=bo, rel=rel)


# ----------------------------------------------------------------------------
if __name__ == "__main__":
    B, S, D = 2, 8, 32
    NUM_HEADS, WIDTH = 4, 2

    root = jax.random.PRNGKey(0)
    kp, kx = jax.random.split(root)
    params = init_params(kp, D, NUM_HEADS, WIDTH)
    x = jax.random.normal(kx, (B, S, D), jnp.float32)

    # key-padding mask (1 = attend, 0 = masked): kept (B, 1, S) — the kernel
    # never materializes the dense (B, S, S) table for this case.
    lengths = jnp.array([S, S - 3], jnp.int32)
    pad_mask = (jnp.arange(S)[None, None, :] < lengths[:, None, None]).astype(jnp.int32)
    full_mask = jnp.broadcast_to(pad_mask, (B, S, S))

    cases = [
        ("pad/l2r", pad_mask, True),
        ("pad/r2l", pad_mask, False),
        ("full/l2r", full_mask, True),
        ("none/r2l", None, False),
    ]
    for name, mask, l2r in cases:
        out = mha_relpos(x, x, x, mask, params, num_heads=NUM_HEADS,
                         width=WIDTH, left_to_right=l2r)
        out = jax.block_until_ready(out)
        assert out.shape == (B, S, D), name
        assert bool(jnp.all(jnp.isfinite(out))), name
        ref = mha_relpos_reference(x, x, x, mask, params, num_heads=NUM_HEADS,
                                   width=WIDTH, left_to_right=l2r)
        err = float(jnp.max(jnp.abs(out - ref)))
        assert err < 7.5e-2, f"{name}: max abs error vs reference too large: {err}"

    print("KERNEL_OK")
</pallas_src>

<mosaic_0001>
module attributes {stable_mosaic.version = 11 : i64} {
  func.func @_mha_relpos_kernel(%arg0: i32, %arg1: i32, %arg2: memref<1x8x32xbf16, #tpu.memory_space<vmem>>, %arg3: memref<1x8x32xbf16, #tpu.memory_space<vmem>>, %arg4: memref<1x8x32xbf16, #tpu.memory_space<vmem>>, %arg5: memref<1x1x1x8xi32, #tpu.memory_space<vmem>>, %arg6: memref<32x32xbf16, #tpu.memory_space<vmem>>, %arg7: memref<1x32xf32, #tpu.memory_space<vmem>>, %arg8: memref<32x32xbf16, #tpu.memory_space<vmem>>, %arg9: memref<1x32xf32, #tpu.memory_space<vmem>>, %arg10: memref<32x32xbf16, #tpu.memory_space<vmem>>, %arg11: memref<1x32xf32, #tpu.memory_space<vmem>>, %arg12: memref<32x32xbf16, #tpu.memory_space<vmem>>, %arg13: memref<1x32xf32, #tpu.memory_space<vmem>>, %arg14: memref<4x3x8xbf16, #tpu.memory_space<vmem>>, %arg15: memref<1x8x32xf32, #tpu.memory_space<vmem>>, %arg16: memref<4x8x8xbf16, #tpu.memory_space<vmem>>, %arg17: memref<4x8x8xbf16, #tpu.memory_space<vmem>>, %arg18: memref<4x8x8xf32, #tpu.memory_space<vmem>>, %arg19: memref<4x8x1xf32, #tpu.memory_space<vmem>>, %arg20: memref<4x8x1xf32, #tpu.memory_space<vmem>>, %arg21: memref<4x8x8xf32, #tpu.memory_space<vmem>>) attributes {dimension_semantics = [#tpu.dimension_semantics<parallel>, #tpu.dimension_semantics<arbitrary>], iteration_bounds = array<i64: 2, 1>, scalar_prefetch = 0 : i64, scratch_operands = 6 : i64, tpu.core_type = #tpu.core_type<tc>, window_params = [{transform_indices = @transform_0, window_bounds = array<i64: 1, 8, 32>}, {transform_indices = @transform_1, window_bounds = array<i64: 1, 8, 32>}, {transform_indices = @transform_2, window_bounds = array<i64: 1, 8, 32>}, {transform_indices = @transform_3, window_bounds = array<i64: 1, 1, 1, 8>}, {pipeline_mode = #tpu.pipeline_mode<synchronous>, transform_indices = @transform_4, window_bounds = array<i64: 32, 32>}, {pipeline_mode = #tpu.pipeline_mode<synchronous>, transform_indices = @transform_5, window_bounds = array<i64: 1, 32>}, {pipeline_mode = #tpu.pipeline_mode<synchronous>, transform_indices = @transform_6, window_bounds = array<i64: 32, 32>}, {pipeline_mode = #tpu.pipeline_mode<synchronous>, transform_indices = @transform_7, window_bounds = array<i64: 1, 32>}, {pipeline_mode = #tpu.pipeline_mode<synchronous>, transform_indices = @transform_8, window_bounds = array<i64: 32, 32>}, {pipeline_mode = #tpu.pipeline_mode<synchronous>, transform_indices = @transform_9, window_bounds = array<i64: 1, 32>}, {pipeline_mode = #tpu.pipeline_mode<synchronous>, transform_indices = @transform_10, window_bounds = array<i64: 32, 32>}, {pipeline_mode = #tpu.pipeline_mode<synchronous>, transform_indices = @transform_11, window_bounds = array<i64: 1, 32>}, {pipeline_mode = #tpu.pipeline_mode<synchronous>, transform_indices = @transform_12, window_bounds = array<i64: 4, 3, 8>}, {transform_indices = @transform_13, window_bounds = array<i64: 1, 8, 32>}]} {
    %c0_i32 = arith.constant 0 : i32
    %0 = arith.cmpi eq, %arg1, %c0_i32 : i32
    %1 = arith.extui %0 : i1 to i32
    %c0_i32_0 = arith.constant 0 : i32
    %2 = arith.cmpi ne, %1, %c0_i32_0 : i32
    scf.if %2 {
      %c0_84 = arith.constant 0 : index
      %c0_85 = arith.constant 0 : index
      %c0_86 = arith.constant 0 : index
      %94 = vector.load %arg3[%c0_84, %c0_85, %c0_86] : memref<1x8x32xbf16, #tpu.memory_space<vmem>>, vector<1x8x32xbf16>
      %95 = vector.shape_cast %94 : vector<1x8x32xbf16> to vector<8x32xbf16>
      %c0_87 = arith.constant 0 : index
      %c0_88 = arith.constant 0 : index
      %96 = vector.load %arg8[%c0_87, %c0_88] : memref<32x32xbf16, #tpu.memory_space<vmem>>, vector<32x32xbf16>
      %cst_89 = arith.constant dense<0.000000e+00> : vector<8x32xf32>
      %97 = tpu.matmul %95, %96, %cst_89 {dimension_numbers = #tpu.dot_dimension_numbers<[1], [1], [0], [0], [0, 0, 1, 0], [], []>} : vector<8x32xbf16>, vector<32x32xbf16>, vector<8x32xf32> -> vector<8x32xf32>
      %c0_90 = arith.constant 0 : index
      %c0_91 = arith.constant 0 : index
      %98 = vector.load %arg9[%c0_90, %c0_91] : memref<1x32xf32, #tpu.memory_space<vmem>>, vector<1x32xf32>
      %99 = vector.broadcast %98 : vector<1x32xf32> to vector<8x32xf32>
      %100 = arith.addf %97, %99 : vector<8x32xf32>
      %c0_92 = arith.constant 0 : index
      %c0_93 = arith.constant 0 : index
      %c0_94 = arith.constant 0 : index
      %101 = vector.load %arg4[%c0_92, %c0_93, %c0_94] : memref<1x8x32xbf16, #tpu.memory_space<vmem>>, vector<1x8x32xbf16>
      %102 = vector.shape_cast %101 : vector<1x8x32xbf16> to vector<8x32xbf16>
      %c0_95 = arith.constant 0 : index
      %c0_96 = arith.constant 0 : index
      %103 = vector.load %arg10[%c0_95, %c0_96] : memref<32x32xbf16, #tpu.memory_space<vmem>>, vector<32x32xbf16>
      %cst_97 = arith.constant dense<0.000000e+00> : vector<8x32xf32>
      %104 = tpu.matmul %102, %103, %cst_97 {dimension_numbers = #tpu.dot_dimension_numbers<[1], [1], [0], [0], [0, 0, 1, 0], [], []>} : vector<8x32xbf16>, vector<32x32xbf16>, vector<8x32xf32> -> vector<8x32xf32>
      %c0_98 = arith.constant 0 : index
      %c0_99 = arith.constant 0 : index
      %105 = vector.load %arg11[%c0_98, %c0_99] : memref<1x32xf32, #tpu.memory_space<vmem>>, vector<1x32xf32>
      %106 = vector.broadcast %105 : vector<1x32xf32> to vector<8x32xf32>
      %107 = arith.addf %104, %106 : vector<8x32xf32>
      %108 = arith.truncf %100 : vector<8x32xf32> to vector<8x32xbf16>
      %109 = vector.shape_cast %108 : vector<8x32xbf16> to vector<8x4x8xbf16>
      %110 = tpu.transpose %109, [1, 0, 2] : vector<8x4x8xbf16> -> vector<4x8x8xbf16>
      %c0_100 = arith.constant 0 : index
      %c0_101 = arith.constant 0 : index
      %c0_102 = arith.constant 0 : index
      %111 = vector.load %arg16[%c0_100, %c0_101, %c0_102] : memref<4x8x8xbf16, #tpu.memory_space<vmem>>, vector<4x8x8xbf16>
      tpu.vector_store %arg16[%c0_100, %c0_101, %c0_102], %110 {strides = array<i32>} : memref<4x8x8xbf16, #tpu.memory_space<vmem>>, vector<4x8x8xbf16>,
      %112 = arith.truncf %107 : vector<8x32xf32> to vector<8x32xbf16>
      %113 = vector.shape_cast %112 : vector<8x32xbf16> to vector<8x4x8xbf16>
      %114 = tpu.transpose %113, [1, 0, 2] : vector<8x4x8xbf16> -> vector<4x8x8xbf16>
      %c0_103 = arith.constant 0 : index
      %c0_104 = arith.constant 0 : index
      %c0_105 = arith.constant 0 : index
      %115 = vector.load %arg17[%c0_103, %c0_104, %c0_105] : memref<4x8x8xbf16, #tpu.memory_space<vmem>>, vector<4x8x8xbf16>
      tpu.vector_store %arg17[%c0_103, %c0_104, %c0_105], %114 {strides = array<i32>} : memref<4x8x8xbf16, #tpu.memory_space<vmem>>, vector<4x8x8xbf16>,
    } else {
    }
    %c0 = arith.constant 0 : index
    %c0_1 = arith.constant 0 : index
    %c0_2 = arith.constant 0 : index
    %3 = vector.load %arg2[%c0, %c0_1, %c0_2] : memref<1x8x32xbf16, #tpu.memory_space<vmem>>, vector<1x8x32xbf16>
    %4 = vector.shape_cast %3 : vector<1x8x32xbf16> to vector<8x32xbf16>
    %c0_3 = arith.constant 0 : index
    %c0_4 = arith.constant 0 : index
    %5 = vector.load %arg6[%c0_3, %c0_4] : memref<32x32xbf16, #tpu.memory_space<vmem>>, vector<32x32xbf16>
    %cst = arith.constant dense<0.000000e+00> : vector<8x32xf32>
    %6 = tpu.matmul %4, %5, %cst {dimension_numbers = #tpu.dot_dimension_numbers<[1], [1], [0], [0], [0, 0, 1, 0], [], []>} : vector<8x32xbf16>, vector<32x32xbf16>, vector<8x32xf32> -> vector<8x32xf32>
    %c0_5 = arith.constant 0 : index
    %c0_6 = arith.constant 0 : index
    %7 = vector.load %arg7[%c0_5, %c0_6] : memref<1x32xf32, #tpu.memory_space<vmem>>, vector<1x32xf32>
    %8 = vector.broadcast %7 : vector<1x32xf32> to vector<8x32xf32>
    %9 = arith.addf %6, %8 : vector<8x32xf32>
    %cst_7 = arith.constant 0.353553385 : f32
    %10 = vector.broadcast %cst_7 : f32 to vector<8x32xf32>
    %11 = arith.mulf %9, %10 : vector<8x32xf32>
    %12 = arith.truncf %11 : vector<8x32xf32> to vector<8x32xbf16>
    %13 = vector.shape_cast %12 : vector<8x32xbf16> to vector<8x4x8xbf16>
    %14 = tpu.transpose %13, [1, 0, 2] : vector<8x4x8xbf16> -> vector<4x8x8xbf16>
    %c0_8 = arith.constant 0 : index
    %c0_9 = arith.constant 0 : index
    %c0_10 = arith.constant 0 : index
    %15 = vector.load %arg14[%c0_8, %c0_9, %c0_10] : memref<4x3x8xbf16, #tpu.memory_space<vmem>>, vector<4x3x8xbf16>
    "tpu.trace_start"() <{level = 10 : i32, message = "hqd,hpd->hqp"}> : () -> ()
    %cst_11 = arith.constant dense<0.000000e+00> : vector<4x8x3xf32>
    %16 = tpu.matmul %14, %15, %cst_11 {dimension_numbers = #tpu.dot_dimension_numbers<[2], [2], [1], [1], [0, 0, 0, 1, 1, 1], [0], [0]>} : vector<4x8x8xbf16>, vector<4x3x8xbf16>, vector<4x8x3xf32> -> vector<4x8x3xf32>
    %cst_12 = arith.constant -1.000000e+30 : f32
    "tpu.trace_stop"() : () -> ()
    %17 = vector.broadcast %cst_12 : f32 to vector<4x8x1xf32>
    %c0_13 = arith.constant 0 : index
    %c0_14 = arith.constant 0 : index
    %c0_15 = arith.constant 0 : index
    %18 = vector.load %arg19[%c0_13, %c0_14, %c0_15] : memref<4x8x1xf32, #tpu.memory_space<vmem>>, vector<4x8x1xf32>
    tpu.vector_store %arg19[%c0_13, %c0_14, %c0_15], %17 {strides = array<i32>} : memref<4x8x1xf32, #tpu.memory_space<vmem>>, vector<4x8x1xf32>,
    %cst_16 = arith.constant 0.000000e+00 : f32
    %19 = vector.broadcast %cst_16 : f32 to vector<4x8x1xf32>
    %c0_17 = arith.constant 0 : index
    %c0_18 = arith.constant 0 : index
    %c0_19 = arith.constant 0 : index
    %20 = vector.load %arg20[%c0_17, %c0_18, %c0_19] : memref<4x8x1xf32, #tpu.memory_space<vmem>>, vector<4x8x1xf32>
    tpu.vector_store %arg20[%c0_17, %c0_18, %c0_19], %19 {strides = array<i32>} : memref<4x8x1xf32, #tpu.memory_space<vmem>>, vector<4x8x1xf32>,
    %cst_20 = arith.constant 0.000000e+00 : f32
    %21 = vector.broadcast %cst_20 : f32 to vector<4x8x8xf32>
    %c0_21 = arith.constant 0 : index
    %c0_22 = arith.constant 0 : index
    %c0_23 = arith.constant 0 : index
    %22 = vector.load %arg21[%c0_21, %c0_22, %c0_23] : memref<4x8x8xf32, #tpu.memory_space<vmem>>, vector<4x8x8xf32>
    tpu.vector_store %arg21[%c0_21, %c0_22, %c0_23], %21 {strides = array<i32>} : memref<4x8x8xf32, #tpu.memory_space<vmem>>, vector<4x8x8xf32>,
    %c8_i32 = arith.constant 8 : i32
    %23 = arith.muli %arg1, %c8_i32 : i32
    %c2_i32 = arith.constant 2 : i32
    %24 = arith.subi %23, %c2_i32 : i32
    %c8_i32_24 = arith.constant 8 : i32
    %25 = arith.addi %23, %c8_i32_24 : i32
    %c1_i32 = arith.constant 1 : i32
    %26 = arith.subi %25, %c1_i32 : i32
    %c0_i32_25 = arith.constant 0 : i32
    %c1_i32_26 = arith.constant 1 : i32
    %27 = arith.muli %c0_i32_25, %c1_i32_26 : i32
    %c0_i32_27 = arith.constant 0 : i32
    %28 = arith.addi %c0_i32_27, %27 : i32
    %c8_i32_28 = arith.constant 8 : i32
    %29 = arith.muli %28, %c8_i32_28 : i32
    %30 = tpu.assume_multiple %29, 8 : i32
    %c0_29 = arith.constant 0 : index
    %31 = arith.index_cast %30 : i32 to index
    %c0_30 = arith.constant 0 : index
    %32 = vector.load %arg16[%c0_29, %31, %c0_30] : memref<4x8x8xbf16, #tpu.memory_space<vmem>>, vector<4x8x8xbf16>
    %c0_31 = arith.constant 0 : index
    %33 = arith.index_cast %30 : i32 to index
    %c0_32 = arith.constant 0 : index
    %34 = vector.load %arg17[%c0_31, %33, %c0_32] : memref<4x8x8xbf16, #tpu.memory_space<vmem>>, vector<4x8x8xbf16>
    "tpu.trace_start"() <{level = 10 : i32, message = "hqd,hkd->hqk"}> : () -> ()
    %cst_33 = arith.constant dense<0.000000e+00> : vector<4x8x8xf32>
    %35 = tpu.matmul %14, %32, %cst_33 {dimension_numbers = #tpu.dot_dimension_numbers<[2], [2], [1], [1], [0, 0, 0, 1, 1, 1], [0], [0]>} : vector<4x8x8xbf16>, vector<4x8x8xbf16>, vector<4x8x8xf32> -> vector<4x8x8xf32>
    "tpu.trace_stop"() : () -> ()
    %c0_34 = arith.constant 0 : index
    %c0_35 = arith.constant 0 : index
    %c0_36 = arith.constant 0 : index
    %36 = vector.load %arg18[%c0_34, %c0_35, %c0_36] : memref<4x8x8xf32, #tpu.memory_space<vmem>>, vector<4x8x8xf32>
    tpu.vector_store %arg18[%c0_34, %c0_35, %c0_36], %35 {strides = array<i32>} : memref<4x8x8xf32, #tpu.memory_space<vmem>>, vector<4x8x8xf32>,
    %37 = arith.cmpi sle, %30, %26 : i32
    %c8_i32_37 = arith.constant 8 : i32
    %38 = arith.addi %30, %c8_i32_37 : i32
    %c1_i32_38 = arith.constant 1 : i32
    %39 = arith.subi %38, %c1_i32_38 : i32
    %40 = arith.cmpi sge, %39, %24 : i32
    %41 = arith.andi %37, %40 : i1
    %42 = arith.extui %41 : i1 to i32
    %c0_i32_39 = arith.constant 0 : i32
    %43 = arith.cmpi ne, %42, %c0_i32_39 : i32
    scf.if %43 {
      %94 = tpu.iota {dimensions = array<i32: 0>} : vector<8x8xi32>
      %95 = vector.broadcast %23 : i32 to vector<8x8xi32>
      %96 = arith.addi %95, %94 : vector<8x8xi32>
      %97 = tpu.iota {dimensions = array<i32: 1>} : vector<8x8xi32>
      %98 = vector.broadcast %30 : i32 to vector<8x8xi32>
      %99 = arith.addi %98, %97 : vector<8x8xi32>
      %100 = arith.subi %96, %99 : vector<8x8xi32>
      %c0_84 = arith.constant 0 : index
      %c0_85 = arith.constant 0 : index
      %c0_86 = arith.constant 0 : index
      %101 = vector.load %arg18[%c0_84, %c0_85, %c0_86] : memref<4x8x8xf32, #tpu.memory_space<vmem>>, vector<4x8x8xf32>
      %c0_i32_87 = arith.constant 0 : i32
      %102 = vector.broadcast %c0_i32_87 : i32 to vector<8x8xi32>
      %103 = arith.cmpi eq, %100, %102 : vector<8x8xi32>
      %104 = vector.shape_cast %103 : vector<8x8xi1> to vector<1x8x8xi1>
      %105 = vector.extract_strided_slice %16 {offsets = [0, 0, 2], sizes = [4, 8, 1], strides = [1, 1, 1]} : vector<4x8x3xf32> to vector<4x8x1xf32>
      %106 = vector.shape_cast %105 : vector<4x8x1xf32> to vector<4x8xf32>
      %107 = vector.shape_cast %106 : vector<4x8xf32> to vector<4x8x1xf32>
      %cst_88 = arith.constant 0.000000e+00 : f32
      %108 = vector.shape_cast %104 : vector<1x8x8xi1> to vector<1x8x8xi1>
      %109 = vector.broadcast %108 : vector<1x8x8xi1> to vector<4x8x8xi1>
      %110 = vector.shape_cast %107 : vector<4x8x1xf32> to vector<4x8x1xf32>
      %111 = vector.broadcast %110 : vector<4x8x1xf32> to vector<4x8x8xf32>
      %112 = vector.broadcast %cst_88 : f32 to vector<4x8x8xf32>
      %113 = arith.select %109, %111, %112 : vector<4x8x8xi1>, vector<4x8x8xf32>
      %114 = arith.addf %101, %113 : vector<4x8x8xf32>
      %c1_i32_89 = arith.constant 1 : i32
      %115 = vector.broadcast %c1_i32_89 : i32 to vector<8x8xi32>
      %116 = arith.cmpi eq, %100, %115 : vector<8x8xi32>
      %117 = vector.shape_cast %116 : vector<8x8xi1> to vector<1x8x8xi1>
      %118 = vector.extract_strided_slice %16 {offsets = [0, 0, 1], sizes = [4, 8, 1], strides = [1, 1, 1]} : vector<4x8x3xf32> to vector<4x8x1xf32>
      %119 = vector.shape_cast %118 : vector<4x8x1xf32> to vector<4x8xf32>
      %120 = vector.shape_cast %119 : vector<4x8xf32> to vector<4x8x1xf32>
      %cst_90 = arith.constant 0.000000e+00 : f32
      %121 = vector.shape_cast %117 : vector<1x8x8xi1> to vector<1x8x8xi1>
      %122 = vector.broadcast %121 : vector<1x8x8xi1> to vector<4x8x8xi1>
      %123 = vector.shape_cast %120 : vector<4x8x1xf32> to vector<4x8x1xf32>
      %124 = vector.broadcast %123 : vector<4x8x1xf32> to vector<4x8x8xf32>
      %125 = vector.broadcast %cst_90 : f32 to vector<4x8x8xf32>
      %126 = arith.select %122, %124, %125 : vector<4x8x8xi1>, vector<4x8x8xf32>
      %127 = arith.addf %114, %126 : vector<4x8x8xf32>
      %c2_i32_91 = arith.constant 2 : i32
      %128 = vector.broadcast %c2_i32_91 : i32 to vector<8x8xi32>
      %129 = arith.cmpi eq, %100, %128 : vector<8x8xi32>
      %130 = vector.shape_cast %129 : vector<8x8xi1> to vector<1x8x8xi1>
      %131 = vector.extract_strided_slice %16 {offsets = [0, 0, 0], sizes = [4, 8, 1], strides = [1, 1, 1]} : vector<4x8x3xf32> to vector<4x8x1xf32>
      %132 = vector.shape_cast %131 : vector<4x8x1xf32> to vector<4x8xf32>
      %133 = vector.shape_cast %132 : vector<4x8xf32> to vector<4x8x1xf32>
      %cst_92 = arith.constant 0.000000e+00 : f32
      %134 = vector.shape_cast %130 : vector<1x8x8xi1> to vector<1x8x8xi1>
      %135 = vector.broadcast %134 : vector<1x8x8xi1> to vector<4x8x8xi1>
      %136 = vector.shape_cast %133 : vector<4x8x1xf32> to vector<4x8x1xf32>
      %137 = vector.broadcast %136 : vector<4x8x1xf32> to vector<4x8x8xf32>
      %138 = vector.broadcast %cst_92 : f32 to vector<4x8x8xf32>
      %139 = arith.select %135, %137, %138 : vector<4x8x8xi1>, vector<4x8x8xf32>
      %140 = arith.addf %127, %139 : vector<4x8x8xf32>
      %c0_93 = arith.constant 0 : index
      %c0_94 = arith.constant 0 : index
      %c0_95 = arith.constant 0 : index
      %141 = vector.load %arg18[%c0_93, %c0_94, %c0_95] : memref<4x8x8xf32, #tpu.memory_space<vmem>>, vector<4x8x8xf32>
      tpu.vector_store %arg18[%c0_93, %c0_94, %c0_95], %140 {strides = array<i32>} : memref<4x8x8xf32, #tpu.memory_space<vmem>>, vector<4x8x8xf32>,
    } else {
    }
    %c0_40 = arith.constant 0 : index
    %c0_41 = arith.constant 0 : index
    %c0_42 = arith.constant 0 : index
    %44 = vector.load %arg18[%c0_40, %c0_41, %c0_42] : memref<4x8x8xf32, #tpu.memory_space<vmem>>, vector<4x8x8xf32>
    %c0_43 = arith.constant 0 : index
    %45 = arith.index_cast %28 : i32 to index
    %c0_44 = arith.constant 0 : index
    %c0_45 = arith.constant 0 : index
    %46 = vector.load %arg5[%c0_43, %45, %c0_44, %c0_45] : memref<1x1x1x8xi32, #tpu.memory_space<vmem>>, vector<1x1x1x8xi32>
    %47 = vector.shape_cast %46 : vector<1x1x1x8xi32> to vector<1x8xi32>
    %c0_i32_46 = arith.constant 0 : i32
    %48 = vector.broadcast %c0_i32_46 : i32 to vector<1x8xi32>
    %49 = arith.cmpi eq, %47, %48 : vector<1x8xi32>
    %50 = vector.shape_cast %49 : vector<1x8xi1> to vector<1x1x8xi1>
    %cst_47 = arith.constant -1.000000e+09 : f32
    %51 = vector.shape_cast %50 : vector<1x1x8xi1> to vector<1x1x8xi1>
    %52 = vector.broadcast %51 : vector<1x1x8xi1> to vector<4x8x8xi1>
    %53 = vector.broadcast %cst_47 : f32 to vector<4x8x8xf32>
    %54 = arith.select %52, %53, %44 : vector<4x8x8xi1>, vector<4x8x8xf32>
    %c0_48 = arith.constant 0 : index
    %c0_49 = arith.constant 0 : index
    %c0_50 = arith.constant 0 : index
    %55 = vector.load %arg19[%c0_48, %c0_49, %c0_50] : memref<4x8x1xf32, #tpu.memory_space<vmem>>, vector<4x8x1xf32>
    %cst_51 = arith.constant dense<0xFF800000> : vector<4x8xf32>
    %56 = vector.multi_reduction <maximumf>, %54, %cst_51 [2] : vector<4x8x8xf32> to vector<4x8xf32>
    %57 = vector.shape_cast %56 : vector<4x8xf32> to vector<4x8x1xf32>
    %58 = arith.maximumf %55, %57 : vector<4x8x1xf32>
    %59 = arith.subf %55, %58 : vector<4x8x1xf32>
    %60 = math.exp %59 : vector<4x8x1xf32>
    %61 = vector.broadcast %58 : vector<4x8x1xf32> to vector<4x8x8xf32>
    %62 = arith.subf %54, %61 : vector<4x8x8xf32>
    %63 = math.exp %62 : vector<4x8x8xf32>
    %c0_52 = arith.constant 0 : index
    %c0_53 = arith.constant 0 : index
    %c0_54 = arith.constant 0 : index
    %64 = vector.load %arg20[%c0_52, %c0_53, %c0_54] : memref<4x8x1xf32, #tpu.memory_space<vmem>>, vector<4x8x1xf32>
    %65 = arith.mulf %60, %64 : vector<4x8x1xf32>
    %cst_55 = arith.constant dense<0.000000e+00> : vector<4x8xf32>
    %66 = vector.multi_reduction <add>, %63, %cst_55 [2] : vector<4x8x8xf32> to vector<4x8xf32>
    %67 = vector.shape_cast %66 : vector<4x8xf32> to vector<4x8x1xf32>
    %68 = arith.addf %65, %67 : vector<4x8x1xf32>
    %c0_56 = arith.constant 0 : index
    %c0_57 = arith.constant 0 : index
    %c0_58 = arith.constant 0 : index
    %69 = vector.load %arg20[%c0_56, %c0_57, %c0_58] : memref<4x8x1xf32, #tpu.memory_space<vmem>>, vector<4x8x1xf32>
    tpu.vector_store %arg20[%c0_56, %c0_57, %c0_58], %68 {strides = array<i32>} : memref<4x8x1xf32, #tpu.memory_space<vmem>>, vector<4x8x1xf32>,
    %c0_59 = arith.constant 0 : index
    %c0_60 = arith.constant 0 : index
    %c0_61 = arith.constant 0 : index
    %70 = vector.load %arg21[%c0_59, %c0_60, %c0_61] : memref<4x8x8xf32, #tpu.memory_space<vmem>>, vector<4x8x8xf32>
    %71 = vector.broadcast %60 : vector<4x8x1xf32> to vector<4x8x8xf32>
    %72 = arith.mulf %71, %70 : vector<4x8x8xf32>
    %73 = arith.truncf %63 : vector<4x8x8xf32> to vector<4x8x8xbf16>
    "tpu.trace_start"() <{level = 10 : i32, message = "hqk,hkd->hqd"}> : () -> ()
    %cst_62 = arith.constant dense<0.000000e+00> : vector<4x8x8xf32>
    %74 = tpu.matmul %73, %34, %cst_62 {dimension_numbers = #tpu.dot_dimension_numbers<[2], [1], [1], [2], [0, 0, 0, 1, 1, 2], [0], [0]>} : vector<4x8x8xbf16>, vector<4x8x8xbf16>, vector<4x8x8xf32> -> vector<4x8x8xf32>
    "tpu.trace_stop"() : () -> ()
    %75 = arith.addf %72, %74 : vector<4x8x8xf32>
    %c0_63 = arith.constant 0 : index
    %c0_64 = arith.constant 0 : index
    %c0_65 = arith.constant 0 : index
    %76 = vector.load %arg21[%c0_63, %c0_64, %c0_65] : memref<4x8x8xf32, #tpu.memory_space<vmem>>, vector<4x8x8xf32>
    tpu.vector_store %arg21[%c0_63, %c0_64, %c0_65], %75 {strides = array<i32>} : memref<4x8x8xf32, #tpu.memory_space<vmem>>, vector<4x8x8xf32>,
    %c0_66 = arith.constant 0 : index
    %c0_67 = arith.constant 0 : index
    %c0_68 = arith.constant 0 : index
    %77 = vector.load %arg19[%c0_66, %c0_67, %c0_68] : memref<4x8x1xf32, #tpu.memory_space<vmem>>, vector<4x8x1xf32>
    tpu.vector_store %arg19[%c0_66, %c0_67, %c0_68], %58 {strides = array<i32>} : memref<4x8x1xf32, #tpu.memory_space<vmem>>, vector<4x8x1xf32>,
    %c1_i32_69 = arith.constant 1 : i32
    %c0_70 = arith.constant 0 : index
    %c0_71 = arith.constant 0 : index
    %c0_72 = arith.constant 0 : index
    %78 = vector.load %arg21[%c0_70, %c0_71, %c0_72] : memref<4x8x8xf32, #tpu.memory_space<vmem>>, vector<4x8x8xf32>
    %c0_73 = arith.constant 0 : index
    %c0_74 = arith.constant 0 : index
    %c0_75 = arith.constant 0 : index
    %79 = vector.load %arg20[%c0_73, %c0_74, %c0_75] : memref<4x8x1xf32, #tpu.memory_space<vmem>>, vector<4x8x1xf32>
    %80 = tpu.reciprocal %79 {approx = true} : vector<4x8x1xf32> -> vector<4x8x1xf32>
    %81 = vector.broadcast %80 : vector<4x8x1xf32> to vector<4x8x8xf32>
    %82 = arith.mulf %78, %81 : vector<4x8x8xf32>
    %83 = arith.truncf %82 : vector<4x8x8xf32> to vector<4x8x8xbf16>
    %84 = tpu.transpose %83, [1, 0, 2] : vector<4x8x8xbf16> -> vector<8x4x8xbf16>
    %85 = vector.shape_cast %84 : vector<8x4x8xbf16> to vector<8x32xbf16>
    %c0_76 = arith.constant 0 : index
    %c0_77 = arith.constant 0 : index
    %86 = vector.load %arg12[%c0_76, %c0_77] : memref<32x32xbf16, #tpu.memory_space<vmem>>, vector<32x32xbf16>
    %cst_78 = arith.constant dense<0.000000e+00> : vector<8x32xf32>
    %87 = tpu.matmul %85, %86, %cst_78 {dimension_numbers = #tpu.dot_dimension_numbers<[1], [1], [0], [0], [0, 0, 1, 0], [], []>} : vector<8x32xbf16>, vector<32x32xbf16>, vector<8x32xf32> -> vector<8x32xf32>
    %c0_79 = arith.constant 0 : index
    %c0_80 = arith.constant 0 : index
    %88 = vector.load %arg13[%c0_79, %c0_80] : memref<1x32xf32, #tpu.memory_space<vmem>>, vector<1x32xf32>
    %89 = vector.broadcast %88 : vector<1x32xf32> to vector<8x32xf32>
    %90 = arith.addf %87, %89 : vector<8x32xf32>
    %c0_81 = arith.constant 0 : index
    %c0_82 = arith.constant 0 : index
    %c0_83 = arith.constant 0 : index
    %91 = vector.load %arg15[%c0_81, %c0_82, %c0_83] : memref<1x8x32xf32, #tpu.memory_space<vmem>>, vector<1x8x32xf32>
    %92 = vector.shape_cast %91 : vector<1x8x32xf32> to vector<8x32xf32>
    %93 = vector.shape_cast %90 : vector<8x32xf32> to vector<1x8x32xf32>
    tpu.vector_store %arg15[%c0_81, %c0_82, %c0_83], %93 {strides = array<i32>} : memref<1x8x32xf32, #tpu.memory_space<vmem>>, vector<1x8x32xf32>,
    return
  }
  func.func @transform_0(%arg0: i32, %arg1: i32) -> (i32, i32, i32) {
    %c0_i32 = arith.constant 0 : i32
    %c0_i32_0 = arith.constant 0 : i32
    return %arg0, %arg1, %c0_i32 : i32, i32, i32
  }
  func.func @transform_1(%arg0: i32, %arg1: i32) -> (i32, i32, i32) {
    %c0_i32 = arith.constant 0 : i32
    %c0_i32_0 = arith.constant 0 : i32
    %c0_i32_1 = arith.constant 0 : i32
    return %arg0, %c0_i32, %c0_i32_0 : i32, i32, i32
  }
  func.func @transform_2(%arg0: i32, %arg1: i32) -> (i32, i32, i32) {
    %c0_i32 = arith.constant 0 : i32
    %c0_i32_0 = arith.constant 0 : i32
    %c0_i32_1 = arith.constant 0 : i32
    return %arg0, %c0_i32, %c0_i32_0 : i32, i32, i32
  }
  func.func @transform_3(%arg0: i32, %arg1: i32) -> (i32, i32, i32, i32) {
    %c0_i32 = arith.constant 0 : i32
    %c0_i32_0 = arith.constant 0 : i32
    %c0_i32_1 = arith.constant 0 : i32
    %c0_i32_2 = arith.constant 0 : i32
    return %arg0, %c0_i32, %c0_i32_0, %c0_i32_1 : i32, i32, i32, i32
  }
  func.func @transform_4(%arg0: i32, %arg1: i32) -> (i32, i32) {
    %c0_i32 = arith.constant 0 : i32
    %c0_i32_0 = arith.constant 0 : i32
    %c0_i32_1 = arith.constant 0 : i32
    return %c0_i32, %c0_i32_0 : i32, i32
  }
  func.func @transform_5(%arg0: i32, %arg1: i32) -> (i32, i32) {
    %c0_i32 = arith.constant 0 : i32
    %c0_i32_0 = arith.constant 0 : i32
    %c0_i32_1 = arith.constant 0 : i32
    return %c0_i32, %c0_i32_0 : i32, i32
  }
  func.func @transform_6(%arg0: i32, %arg1: i32) -> (i32, i32) {
    %c0_i32 = arith.constant 0 : i32
    %c0_i32_0 = arith.constant 0 : i32
    %c0_i32_1 = arith.constant 0 : i32
    return %c0_i32, %c0_i32_0 : i32, i32
  }
  func.func @transform_7(%arg0: i32, %arg1: i32) -> (i32, i32) {
    %c0_i32 = arith.constant 0 : i32
    %c0_i32_0 = arith.constant 0 : i32
    %c0_i32_1 = arith.constant 0 : i32
    return %c0_i32, %c0_i32_0 : i32, i32
  }
  func.func @transform_8(%arg0: i32, %arg1: i32) -> (i32, i32) {
    %c0_i32 = arith.constant 0 : i32
    %c0_i32_0 = arith.constant 0 : i32
    %c0_i32_1 = arith.constant 0 : i32
    return %c0_i32, %c0_i32_0 : i32, i32
  }
  func.func @transform_9(%arg0: i32, %arg1: i32) -> (i32, i32) {
    %c0_i32 = arith.constant 0 : i32
    %c0_i32_0 = arith.constant 0 : i32
    %c0_i32_1 = arith.constant 0 : i32
    return %c0_i32, %c0_i32_0 : i32, i32
  }
  func.func @transform_10(%arg0: i32, %arg1: i32) -> (i32, i32) {
    %c0_i32 = arith.constant 0 : i32
    %c0_i32_0 = arith.constant 0 : i32
    %c0_i32_1 = arith.constant 0 : i32
    return %c0_i32, %c0_i32_0 : i32, i32
  }
  func.func @transform_11(%arg0: i32, %arg1: i32) -> (i32, i32) {
    %c0_i32 = arith.constant 0 : i32
    %c0_i32_0 = arith.constant 0 : i32
    %c0_i32_1 = arith.constant 0 : i32
    return %c0_i32, %c0_i32_0 : i32, i32
  }
  func.func @transform_12(%arg0: i32, %arg1: i32) -> (i32, i32, i32) {
    %c0_i32 = arith.constant 0 : i32
    %c0_i32_0 = arith.constant 0 : i32
    %c0_i32_1 = arith.constant 0 : i32
    %c0_i32_2 = arith.constant 0 : i32
    return %c0_i32, %c0_i32_0, %c0_i32_1 : i32, i32, i32
  }
  func.func @transform_13(%arg0: i32, %arg1: i32) -> (i32, i32, i32) {
    %c0_i32 = arith.constant 0 : i32
    %c0_i32_0 = arith.constant 0 : i32
    return %arg0, %arg1, %c0_i32 : i32, i32, i32
  }
}

</mosaic_0001>

<bundles_post_ra>
// kernel: tpu_custom_call.1
= control target key start
LH: loop header
LB: loop body
LE: loop exit
PB: predicated region body
PF: predicated region fallthrough
CT: control target
= control target key end

     0   :  { %s3365_s0 = inlined_call_operand.hbm [shape: bf16[2,8,32], index: 0, kind: input, shape index: {}]   ;;  %s3366_s1 = inlined_call_operand.hbm [shape: bf16[2,8,32], index: 1, kind: input, shape index: {}]   ;;  %s3367_s2 = inlined_call_operand.hbm [shape: bf16[2,8,32], index: 2, kind: input, shape index: {}]   ;;  %s3368_s3 = inlined_call_operand.hbm [shape: s32[2,1,1,8], index: 3, kind: input, shape index: {}]   ;;  %s3369_s4 = inlined_call_operand.vmem [shape: bf16[32,32], index: 4, kind: input, shape index: {}]   ;;  %s3370_s5 = inlined_call_operand.vmem [shape: f32[1,32], index: 5, kind: input, shape index: {}]   ;;  %s3371_s6 = inlined_call_operand.hbm [shape: bf16[32,32], index: 6, kind: input, shape index: {}]   ;;  %s3372_s7 = inlined_call_operand.vmem [shape: f32[1,32], index: 7, kind: input, shape index: {}]   ;;  %s3373_s8 = inlined_call_operand.hbm [shape: bf16[32,32], index: 8, kind: input, shape index: {}]   ;;  %s3374_s9 = inlined_call_operand.vmem [shape: f32[1,32], index: 9, kind: input, shape index: {}]   ;;  %s3375_s10 = inlined_call_operand.hbm [shape: bf16[32,32], index: 10, kind: input, shape index: {}]   ;;  %s3376_s11 = inlined_call_operand.hbm [shape: f32[1,32], index: 11, kind: input, shape index: {}]   ;;  %s3377_s12 = inlined_call_operand.vmem [shape: bf16[4,3,8], index: 12, kind: input, shape index: {}]   ;;  %s3378_s13 = inlined_call_operand.hbm [shape: f32[2,8,32], index: 13, kind: output, shape index: {}]  }
   0x1   :  { %3390 = sst [smem:[#allocation37_spill]] %s3365_s0 }
   0x2   :  { %3391 = sst [smem:[#allocation38_spill]] %s3366_s1 }
   0x3   :  { %3392 = sst [smem:[#allocation39_spill]] %s3370_s5 }
   0x4   :  { %3393 = sst [smem:[#allocation40_spill]] %s3371_s6 }
   0x5   :  { %3394 = sst [smem:[#allocation41_spill]] %s3373_s8 }
   0x6   :  { %3395 = sst [smem:[#allocation42_spill]] %s3374_s9 }
   0x7   :  { %3396 = sst [smem:[#allocation43_spill]] %s3375_s10 }
   0x8   :  { %3397 = sst [smem:[#allocation44_spill]] %s3377_s12 }
   0x9   :  { %3398 = sst [smem:[#allocation45_spill]] %s3378_s13 }
   0xa   :  { %18 = vsyncpa [#allocation9], 0 }
   0xb   :  { %20 = vsyncpa [#allocation9 + $0x1], 0 }
   0xc   :  { %21 = vsyncpa [#allocation12], 0 }
   0xd   :  { %23 = vsyncpa [#allocation12 + $0x1], 0 }
   0xe   :  { %24 = vsyncpa [#allocation15], 0 }
   0xf   :  { %26 = vsyncpa [#allocation15 + $0x1], 0 }
  0x10   :  { %27 = vsyncpa [#allocation18], 0 }
  0x11   :  { %28 = vsyncpa [#allocation21], 0 }
  0x12   :  { %29 = vsyncpa [#allocation10], 0 }
  0x13   :  { %31 = vsyncpa [#allocation10 + $0x1], 0  ;;  %s2772_s25 = smov 0   ;;  %s2774_s26 = smov 0  }
  0x14   :  { %s2776_s27 = smov 0   ;;  %s2778_s28 = smov 0  }
  0x15   :  { %s2780_s29 = smov 0   ;;  %s2782_s30 = smov 0  }
  0x16 LB: > { %3399 = sst [smem:[#allocation30_spill]] %s2661_s25  ;;  %s2803_s14 = sadd.s32 4294967295, %s2681_s30   ;;  %s2681_s30 = sphi %s2782_s30, %s37_s30   ;;  %s2677_s29 = sphi %s2780_s29, %s3436_s29   ;;  %s2673_s28 = sphi %s2778_s28, %s3435_s28   ;;  %s2669_s27 = sphi %s2776_s27, %s3431_s27   ;;  %s2665_s26 = sphi %s2774_s26, %s3434_s26   ;;  %s2661_s25 = sphi %s2772_s25, %s3433_s25  }
  0x17   : > { %3400 = sst [smem:[#allocation31_spill]] %s2669_s27  ;;  %s2086_s15 = sadd.s32 4294967294, %s2681_s30  }
  0x18   : > { %3401 = sst [smem:[#allocation32_spill]] %s2673_s28  ;;  %p71_p0 = scmp.ne.s32.totalorder %s2665_s26, %s2661_s25 }
  0x19   : > { %p72_p1 = scmp.eq.s32.totalorder %s2803_s14, 0  ;;  %p364_p2 = scmp.eq.s32.totalorder %s2803_s14, 1 }
  0x1a   : > { %p370_p3 = scmp.eq.s32.totalorder %s2086_s15, 1  ;;  %p2087_p5 = scmp.ge.s32.totalorder %s2681_s30, 1 }
  0x1b   : > { %p2812_p4 = por %p72_p1, %p71_p0  ;;  %p377_p7 = scmp.lt.s32.totalorder %s2681_s30, 3 }
  0x1c   : > { %p2817_p6 = por %p370_p3, %p71_p0  ;;  %s3405_s6 = sld [smem:[#allocation40_spill]] }
  0x1d   : > { %p2825_p8 = pnand %p2087_p5, %p377_p7  ;;  %s2683_s22 = smov [#allocation16]  }
  0x1e   : > { %s3403_s17 = scalar_select %p2817_p6, 1, 0 }
  0x1f   : > { %p2194_p9 = pneg %p2825_p8  ;;  %s396_s23 = sshll.u32 %s2683_s22, 4  ;;  %s397_s23 = int_to_ptr.vmem [resolvable:$true] %s396_s23 }
  0x20   : > { %3404 = sst [smem:[#allocation33_spill]] %s3403_s17  ;;  %p2092_p11 = scmp.ge.s32.totalorder %s2681_s30, 2 }
  0x21   : > { %p2833_p10 = pnand %p2194_p9, %p72_p1  ;;  %s3408_s8 = sld [smem:[#allocation41_spill]] }
  0x22   : > { %s394_s20 = sshll.u32 %s3405_s6, 4  ;;  %s3381_s22 = smov 64   ;;  %s395_s20 = int_to_ptr.hbm [resolvable:$true] %s394_s20 }
  0x23   : > { %s3382_s6 = smov 4   ;;  %s2686_s17 = smov [#allocation17]  }
  0x24   : > { %2197 = dma.hbm_to_vmem [thread:$0]  (!%p2833_p10), %s395_s20, 256, %s397_s23, [#allocation15], %s3381_s22, %s3381_s22, %s3382_s6  }
  0x25   : > { %s413_s25 = sshll.u32 %s2686_s17, 4  ;;  %s49_s15 = sadd.s32 1, %s2677_s29  ;;  %s414_s25 = int_to_ptr.vmem [resolvable:$true] %s413_s25 }
  0x26   : > { %s58_s18 = sadd.s32 1, %s2669_s27  ;;  %p51_p12 = scmp.ge.s32.totalorder %s49_s15, 2 }
  0x27   : > { %s411_s19 = sshll.u32 %s3408_s8, 4  ;;  %p65_p13 = scmp.ne.s32.totalorder %s2669_s27, %s2665_s26  ;;  %s412_s19 = int_to_ptr.hbm [resolvable:$true] %s411_s19 }
  0x28   : > { %2200 = dma.hbm_to_vmem [thread:$0]  (!%p2833_p10), %s412_s19, 256, %s414_s25, [#allocation18], %s3381_s22, %s3381_s22, %s3382_s6  }
  0x29   : > { %p66_p0 = scmp.eq.s32.totalorder %s2681_s30, 0  ;;  %p2228_p3 = scmp.lt.s32.totalorder %s2681_s30, 2 }
  0x2a   : > { %s3438_s15 = smov (%p51_p12, %s49_s15), 0  ;;  %p2861_p7 = por %p364_p2, %p65_p13 }
  0x2b   : > { %3409 = sst [smem:[#allocation34_spill]] %s3438_s15  ;;  %p67_p5 = por %p66_p0, %p65_p13 }
  0x2c   : > { %s3410_s17 = scalar_select %p2861_p7, 1, 0 }
  0x2d   : > { %s53_s20 = ssub.s32 %s2677_s29, %s3438_s15  ;;  %s2868_s25 = sand.u32 1, %s2669_s27  }
  0x2e   : > { %3411 = sst [smem:[#allocation35_spill]] %s3410_s17  ;;  %p56_p9 = scmp.eq.s32.totalorder %s53_s20, 0 }
  0x2f   : > { %s2871_s23 = sshll.u32 %s2868_s25, 2  ;;  %s2874_s19 = sshll.u32 %s2677_s29, 2 }
  0x30   : > { %p2876_p12 = pnand %p2228_p3, %p67_p5  ;;  %s3389_s8 = sand.u32 1, %s2681_s30  }
  0x31   : > { %s2881_s6 = scalar_select %p56_p9, %s2669_s27, %s58_s18  }
  0x32   : > { %s3414_s1 = sld [smem:[#allocation38_spill]]  ;;  %s483_s20 = scalar_lea.vmem [#allocation11], %s2871_s23 }
  0x33   : > { %3413 = sst [smem:[#allocation36_spill]] %s2881_s6  ;;  %s491_s28 = sshll.u32 %s483_s20, 4  ;;  %s492_s28 = int_to_ptr.vmem [resolvable:$true] %s491_s28 }
  0x34   : > { %s2891_s12 = scalar_lea.sflag [#allocation12], %s3389_s8  ;;  %s3415_s10 = sld [smem:[#allocation43_spill]] }
  0x35   : > { %s2687_s15 = smov [#allocation19]   ;;  %s3416_s8 = smov 4  }
  0x36   : > { %s430_s17 = sshll.u32 %s2687_s15, 4  ;;  %s3417_s5 = smov 64   ;;  %s431_s17 = int_to_ptr.vmem [resolvable:$true] %s430_s17 }
  0x37   : > { %s2688_s6 = smov [#allocation20]   ;;  %s3418_s0 = sld [smem:[#allocation37_spill]] }
  0x38   : > { %s487_s13 = scalar_lea.hbm %s3414_s1, %s2874_s19  ;;  %s443_s1 = sshll.u32 %s3376_s11, 4  ;;  %s444_s1 = int_to_ptr.hbm [resolvable:$true] %s443_s1 }
  0x39   : > { %s489_s9 = sshll.u32 %s487_s13, 4  ;;  %s463_s13 = scalar_lea.vmem [#allocation8], %s2871_s23  ;;  %s490_s9 = int_to_ptr.hbm [resolvable:$true] %s489_s9 }
  0x3a   : > { %2213 = dma.hbm_to_vmem [thread:$0]  (!%p2876_p12), %s490_s9, 64, %s492_s28, %s2891_s12  }
  0x3b   : > { %s428_s27 = sshll.u32 %s3415_s10, 4  ;;  %s445_s9 = sshll.u32 %s2688_s6, 4  ;;  %s429_s27 = int_to_ptr.hbm [resolvable:$true] %s428_s27  ;;  %s446_s9 = int_to_ptr.vmem [resolvable:$true] %s445_s9 }
  0x3c   : > { %2203 = dma.hbm_to_vmem [thread:$0]  (!%p2833_p10), %s429_s27, 256, %s431_s17, [#allocation18], %s3417_s5, %s3417_s5, %s3416_s8  }
  0x3d   : > { %2206 = dma.hbm_to_vmem [thread:$0]  (!%p2833_p10), %s444_s1, 16, %s446_s9, [#allocation21]  }
  0x3e   : > { %s468_s15 = scalar_lea.hbm %s3418_s0, %s2874_s19  ;;  %s472_s20 = sshll.u32 %s463_s13, 4  ;;  %s473_s20 = int_to_ptr.vmem [resolvable:$true] %s472_s20 }
  0x3f   : > { %s470_s10 = sshll.u32 %s468_s15, 4  ;;  %s460_s5 = scalar_lea.sflag [#allocation9], %s2868_s25  ;;  %s471_s10 = int_to_ptr.hbm [resolvable:$true] %s470_s10 }
  0x40   : > { %2210 = dma.hbm_to_vmem [thread:$0]  (!%p2876_p12), %s471_s10, 64, %s473_s20, %s460_s5  }
  0x41   : > { %s506_s1 = scalar_lea.hbm %s3367_s2, %s2874_s19  ;;  %s502_s24 = scalar_lea.vmem [#allocation13], %s2871_s23 }
  0x42   : > { %s510_s17 = sshll.u32 %s502_s24, 4  ;;  %s508_s6 = sshll.u32 %s506_s1, 4  ;;  %s511_s17 = int_to_ptr.vmem [resolvable:$true] %s510_s17  ;;  %s509_s6 = int_to_ptr.hbm [resolvable:$true] %s508_s6 }
  0x43   : > { %2216 = dma.hbm_to_vmem [thread:$0]  (!%p2876_p12), %s509_s6, 64, %s511_s17, %s2891_s12  }
  0x44   : > { %s523_s18 = scalar_lea.hbm %s3368_s3, %s2677_s29  ;;  %s520_s15 = scalar_lea.vmem [#allocation14], %s2868_s25 }
  0x45   : > { %s527_s13 = sshll.u32 %s520_s15, 4  ;;  %s525_s0 = sshll.u32 %s523_s18, 4  ;;  %s528_s13 = int_to_ptr.vmem [resolvable:$true] %s527_s13  ;;  %s526_s0 = int_to_ptr.hbm [resolvable:$true] %s525_s0 }
  0x46   : > { %s3419_s10 = sand.u32 1, %s2681_s30   ;;  %536 = sbr.rel (%p2825_p8) target bundleno = 1488 (0x5d0), region = 72 }
  0x47   : > { %s518_s20 = scalar_lea.sflag [#allocation15], %s3419_s10  ;;  %s2937_s23 = sand.u32 (!%p2825_p8), 1, %s2665_s26  }
  0x48   : > { %2219 = dma.hbm_to_vmem [thread:$0]  (!%p2876_p12), %s526_s0, 16, %s528_s13, %s518_s20  }
  0x49   : > { %s2940_s12 = sshll.u32 (!%p2825_p8), %s2937_s23, 2  ;;  %s539_s25 = scalar_lea.sflag (!%p2825_p8), [#allocation9], %s2937_s23 }
  0x4a   : > { %s542_s19 = scalar_lea.vmem (!%p2825_p8), [#allocation8], %s2940_s12 }
  0x4b   : > { %2632 = dma.done.wait (%p2812_p4), %s539_s25, 64  }
  0x4c   : > { %2634 = vsyncadd (%p2812_p4), %s539_s25, 4294967232  ;;  %s548_s0 = sand.u32 1, %s2803_s14   ;;  %s552_s22 = scalar_lea.vmem [#allocation11], %s2940_s12 }
  0x4d   : > { %s549_s21 = scalar_lea.sflag [#allocation12], %s548_s0 }
  0x4e   : > { %2636 = dma.done.wait (%p2812_p4), %s549_s21, 128  }
  0x4f   : > { %2638 = vsyncadd (%p2812_p4), %s549_s21, 4294967168  ;;  %s562_s5 = scalar_lea.vmem [#allocation13], %s2940_s12  ;;  %s569_s8 = scalar_lea.sflag [#allocation15], %s548_s0 }
  0x50   : > { %s571_s27 = scalar_lea.vmem [#allocation14], %s2937_s23 }
  0x51   : > { %2640 = dma.done.wait (%p2812_p4), %s569_s8, 16  }
  0x52   : > { %2642 = vsyncadd (%p2812_p4), %s569_s8, 4294967280 }
  0x53   : > { %2644 = dma.done.wait (%p72_p1), [#allocation15], 256  }
  0x54   : > { %2646 = vsyncadd (%p72_p1), [#allocation15], 4294967040 }
  0x55   : > { %2648 = dma.done.wait (%p72_p1), [#allocation18], 512  }
  0x56   : > { %2650 = vsyncadd (%p72_p1), [#allocation18], 4294966784 }
  0x57   : > { %2652 = dma.done.wait (%p72_p1), [#allocation21], 16  }
  0x58   : > { %2654 = vsyncadd (%p72_p1), [#allocation21], 4294967280  ;;  %vm673_vm0 = vcmask 261120   ;;  %v2165_v0 = vld [vmem:[%s3369_s4 + $0x8] sm:$0xff]  ;;  %v2164_v4 = vld [vmem:[%s3369_s4] sm:$0xff]  ;;  %s3420_s18 = sld [smem:[#allocation39_spill]] }
  0x59   : > { %v2161_v1 = vld [vmem:[#allocation16 + $0x8] sm:$0xff]  ;;  %v1026_v2 = vsel %vm673_vm0, %v2165_v0, 0  ;;  %v2160_v5 = vld [vmem:[#allocation16] sm:$0xff]  ;;  %v1023_v6 = vsel %vm673_vm0, %v2164_v4, 0  ;;  %s2689_s15 = smov 112   ;;  %s2690_s13 = smov 104  }
  0x5a   : > { %1034 = vmatpush.bf16.xpose.msra.mxu2 %v1026_v2  ;;  %v681_v3 = vsel %vm673_vm0, %v2161_v1, 0  ;;  %v678_v7 = vsel %vm673_vm0, %v2160_v5, 0  ;;  %v999_v8 = vld [vmem:[%s542_s19] sm:$0xf]  ;;  %v654_v9 = vld [vmem:[%s552_s22] sm:$0xf] }
  0x5b   : > { %689 = vmatpush.bf16.xpose.msra.mxu0 %v681_v3  ;;  %v2312_v10 = vld [vmem:[%s3372_s7] ss:$0 sm:$0xff]  ;;  %s2691_s10 = smov 120   ;;  %v2163_v21 = vld [vmem:[#allocation17 + $0x8] sm:$0xff]  ;;  %v2162_v23 = vld [vmem:[#allocation17] sm:$0xff]  ;;  %vm1169_vm1 = vcmask 64512  }
  0x5c   : > { %v722_v22 = vsel %vm673_vm0, %v2163_v21, 0  ;;  %v719_v25 = vsel %vm673_vm0, %v2162_v23, 0  ;;  %v696_v26 = vld [vmem:[%s562_s5] sm:$0xf]  ;;  %s3421_s19 = sld [smem:[#allocation44_spill]]  ;;  %vm768_vm2 = vcmask 1047556  }
  0x5d   : > { %730 = vmatpush.bf16.xpose.msra.mxu1 %v722_v22  ;;  %v2692_v29 = vmov 1983009808   ;;  %v2693_v49 = vmov 1934713408   ;;  %vm864_vm3 = vcmask 60416   ;;  %s3422_s24 = sld [smem:[#allocation42_spill]] }
  0x5e   : > { %v2311_v13 = vld [vmem:[%s3420_s18] ss:$0 sm:$0xff]  ;;  %v759_v30 = vunpack.c.l.s4 %v2692_v29  ;;  %v773_v50 = vunpack.c.l.s4 %v2693_v49  ;;  %vm1246_vm9 = vcmask 7168   ;;  %vm1587_vm10 = vcmask 1043456   ;;  %s2700_s17 = smov 16   ;;  %s2701_s14 = smov 24  }
  0x5f   : > { %s3425_s6 = sld [smem:[#allocation32_spill]]  ;;  %vm1842_vm11 = vcmask 130048   ;;  %vm1845_vm12 = vcmask 195584   ;;  %s2107_s28 = sshll.u32 %s2937_s23, 3 }
  0x60   : > { %v3016_v40 = vunpack.c.0.s8 %v759_v30  ;;  %v3028_v63 = vunpack.c.0.s8 %v773_v50  ;;  %s648_s25 = scalar_lea.vmem [#allocation22], %s2107_s28  ;;  %s1889_s21 = scalar_lea.sflag [#allocation10], %s2937_s23 }
  0x61   : > { %s1902_s12 = sshll.u32 %s648_s25, 4  ;;  %s1903_s12 = int_to_ptr.vmem [resolvable:$true] %s1902_s12 }
  0x62   : > { %1035 = vmatpush.bf16.xpose.msra.mxu2 %v1023_v6  ;;  %v1165_v28 = vld [vmem:[%s3421_s19] sm:$0x3]  ;;  %v1167_v37 = vld [vmem:[%s3421_s19 + $0x4] sm:$0x3]  ;;  %v1168_v43 = vld [vmem:[%s3421_s19 + $0x6] sm:$0x3] }
  0x63   : > { %690 = vmatpush.bf16.xpose.msra.mxu0 %v678_v7  ;;  %v1174_v31 = vsel %vm1169_vm1, %v1165_v28, 0  ;;  %v1212_v39 = vsel %vm1169_vm1, %v1167_v37, 0  ;;  %v1231_v44 = vsel %vm1169_vm1, %v1168_v43, 0 }
  0x64   : > { %1183 = vmatpush.bf16.xpose.msra.mxu3 %v1174_v31 }
  0x65   : > { %731 = vmatpush.bf16.xpose.msra.mxu1 %v719_v25  ;;  %s2157_s9 = sshll.u32 %s3425_s6, 3 }
  0x69   : > { %2134 = vmatmul.msk.bf16.vlgmr.msra.gmra.mxu2 %vm673_vm0, %v999_v8 }
  0x6a   : > { %2116 = vmatmul.msk.bf16.vlgmr.msra.gmra.mxu0 %vm673_vm0, %v654_v9 }
  0x6b   : > { %1221 = vmatpush.bf16.xpose.msrb.mxu0 %v1212_v39 }
  0x6c   : > { %2125 = vmatmul.msk.bf16.vlgmr.msra.gmra.mxu1 %vm673_vm0, %v696_v26 }
  0x6d   : > { %1240 = vmatpush.bf16.xpose.msrb.mxu1 %v1231_v44 }
  0xe7   : > { %v692_v11 = vpop.f32.mrf.mxu0 }
  0xe8   : > { %v693_v12 = vadd.f32 %v2312_v10, %v692_v11  ;;  %v1166_v10 = vld [vmem:[%s3421_s19 + $0x2] sm:$0x3] }
  0xea   : > { %v2992_v14 = vpack.c.bf16 %v693_v12, %v693_v12 }
  0xec   : > { %v1037_v15 = vpop.f32.mrf.mxu2  ;;  %741 = vrot.lane.b32.xlu2 %v2992_v14, %s2689_s15  ;;  %v748_v51 = vshrl.u32 %v2992_v14, 16 }
  0xed   : > { %v1038_v16 = vadd.f32 %v2311_v13, %v1037_v15 }
  0xef   : > { %v1041_v17 = vmul.f32 0.35355338, %v1038_v16  ;;  %v694_v18 = vpop.f32.mrf.mxu0 }
  0xf0   : > { %v1193_v18 = vsel %vm1169_vm1, %v1166_v10, 0 }
  0xf1   : > { %v1042_v19 = vpack.c.bf16 %v1041_v17, %v1041_v17  ;;  %1202 = vmatpush.bf16.xpose.msrb.mxu3 %v1193_v18 }
  0xf3   : > { %1048 = vrot.lane.b32.xlu1 %v1042_v19, %s2690_s13  ;;  %1044 = vrot.lane.b32.xlu0 %v1042_v19, %s2691_s10  ;;  %v1053_v42 = vshrl.u32 %v1042_v19, 16 }
  0xf4   : > { %v1039_v20 = vpop.f32.mrf.mxu2  ;;  %743 = vrot.lane.b32.xlu2 %v2992_v14, %s2690_s13 }
  0xfb   : > { %1046 = vrot.lane.b32.xlu0 %v1042_v19, %s2689_s15  ;;  %739 = vrot.lane.b32.xlu1 %v2992_v14, %s2691_s10 }
 0x146   : > { %v742_v24 = vpop.permute.xlu2 %741 }
 0x147   : > { %v754_v32 = vshrl.u32 %v742_v24, 16 }
 0x14e   : > { %v744_v27 = vpop.permute.xlu2 %743 }
 0x14f   : > { %v753_v35 = vpack.i.b16 %v744_v27, %v742_v24  ;;  %v755_v36 = vshrl.u32 %v744_v27, 16 }
 0x151   : > { %v756_v46 = vpack.i.b16 %v755_v36, %v754_v32  ;;  %v766_v47 = vperm.slane %v753_v35, %v3016_v40 }
 0x153   : > { %v767_v54 = vrot.slane %v766_v47, 4  ;;  %v793_v55 = vperm.slane %v756_v46, %v3016_v40 }
 0x155   : > { %v794_v5 = vrot.slane %v793_v55, 4 }
 0x165   : > { %v1049_v33 = vpop.permute.xlu1 %1048  ;;  %v1045_v34 = vpop.permute.xlu0 %1044 }
 0x166   : > { %v1054_v38 = vshrl.u32 %v1045_v34, 16  ;;  %v1052_v41 = vpack.i.b16 %v1045_v34, %v1042_v19  ;;  %v1060_v52 = vshrl.u32 %v1049_v33, 16 }
 0x168   : > { %v1055_v45 = vpack.i.b16 %v1054_v38, %v1053_v42  ;;  %v1066_v48 = vperm.slane %v1052_v41, %v3016_v40 }
 0x16a   : > { %v1093_v53 = vperm.slane %v1055_v45, %v3016_v40  ;;  %v1075_v62 = vrot.slane %v1066_v48, 4 }
 0x16c   : > { %v1101_v4 = vrot.slane %v1093_v53, 4 }
 0x16d   : > { %v1047_v56 = vpop.permute.xlu0 %1046  ;;  %v740_v57 = vpop.permute.xlu1 %739 }
 0x16e   : > { %v1058_v58 = vpack.i.b16 %v1049_v33, %v1047_v56  ;;  %v1059_v59 = vshrl.u32 %v1047_v56, 16  ;;  %v747_v60 = vpack.i.b16 %v740_v57, %v2992_v14  ;;  %v749_v61 = vshrl.u32 %v740_v57, 16 }
 0x170   : > { %v1061_v0 = vpack.i.b16 %v1060_v52, %v1059_v59  ;;  %v1071_v1 = vperm.slane %v1058_v58, %v3016_v40  ;;  %v750_v2 = vpack.i.b16 %v749_v61, %v748_v51  ;;  %v761_v3 = vperm.slane %v747_v60, %v3016_v40 }
 0x172   : > { %v1072_v6 = vrot.slane %v1071_v1, 4  ;;  %v1076_v7 = vsel %vm768_vm2, %v1071_v1, %v1075_v62  ;;  %v1098_v8 = vperm.slane %v1061_v0, %v3016_v40  ;;  %v769_v9 = vsel %vm768_vm2, %v767_v54, %v761_v3 }
 0x173   : > { %v1084_v11 = vperm.slane %v1076_v7, %v3028_v63  ;;  %v770_v12 = vrot.slane %v761_v3, 4  ;;  %v775_v13 = vperm.slane %v769_v9, %v3028_v63  ;;  %v788_v14 = vperm.slane %v750_v2, %v3016_v40 }
 0x174   : > { %v1074_v15 = vsel %vm768_vm2, %v1072_v6, %v1066_v48  ;;  %v1099_v16 = vrot.slane %v1098_v8, 4  ;;  %v1102_v17 = vsel %vm768_vm2, %v1098_v8, %v1101_v4 }
 0x175   : > { %v1080_v19 = vperm.slane %v1074_v15, %v3028_v63  ;;  %v1087_v20 = vrot.slane %v1084_v11, 4  ;;  %v1110_v21 = vperm.slane %v1102_v17, %v3028_v63  ;;  %v771_v22 = vsel %vm768_vm2, %v766_v47, %v770_v12 }
 0x176   : > { %v1100_v23 = vsel %vm768_vm2, %v1099_v16, %v1093_v53  ;;  %v779_v24 = vperm.slane %v771_v22, %v3028_v63  ;;  %v780_v25 = vrot.slane %v775_v13, 4  ;;  %v795_v26 = vsel %vm768_vm2, %v794_v5, %v788_v14 }
 0x177   : > { %v1085_v27 = vrot.slane %v1080_v19, 4  ;;  %v1088_v28 = vsel %vm768_vm2, 0, %v1087_v20  ;;  %v1106_v29 = vperm.slane %v1100_v23, %v3028_v63  ;;  %v1113_v30 = vrot.slane %v1110_v21, 4 }
 0x178   : > { %v1120_v31 = vrot.slane %v1088_v28, 4  ;;  %v782_v32 = vrot.slane %v779_v24, 4  ;;  %v796_v36 = vrot.slane %v788_v14, 4  ;;  %v781_v38 = vsel %vm768_vm2, 0, %v780_v25 }
 0x179   : > { %v1086_v33 = vsel %vm768_vm2, 0, %v1085_v27  ;;  %v1111_v34 = vrot.slane %v1106_v29, 4  ;;  %v1114_v35 = vsel %vm768_vm2, 0, %v1113_v30  ;;  %v801_v41 = vperm.slane %v795_v26, %v3028_v63 }
 0x17a   : > { %v1139_v37 = vrot.slane %v1114_v35, 4  ;;  %v783_v39 = vsel %vm768_vm2, 0, %v782_v32  ;;  %v797_v43 = vsel %vm768_vm2, %v793_v55, %v796_v36  ;;  %v1115_v45 = vsel %vm768_vm2, %v1087_v20, %v1080_v19 }
 0x17b   : > { %v1112_v42 = vsel %vm768_vm2, 0, %v1111_v34  ;;  %v815_v44 = vrot.slane %v783_v39, 4  ;;  %v805_v46 = vperm.slane %v797_v43, %v3028_v63  ;;  %v806_v47 = vrot.slane %v801_v41, 4 }
 0x17c   : > { %v1121_v48 = vsel %vm768_vm2, %v1120_v31, %v1086_v33  ;;  %v810_v49 = vsel %vm768_vm2, %v782_v32, %v775_v13  ;;  %v1140_v52 = vsel %vm768_vm2, %v1139_v37, %v1112_v42  ;;  %v1134_v55 = vsel %vm768_vm2, %v1113_v30, %v1106_v29 }
 0x17d   : > { %v816_v50 = vsel %vm768_vm2, %v815_v44, %v781_v38  ;;  %v1125_v51 = vperm.slane %v1121_v48, %v3016_v40  ;;  %v808_v53 = vrot.slane %v805_v46, 4  ;;  %v1119_v56 = vperm.slane %v1115_v45, %v3016_v40 }
 0x17e   : > { %v820_v54 = vperm.slane %v816_v50, %v3016_v40  ;;  %v1144_v58 = vperm.slane %v1140_v52, %v3016_v40  ;;  %v807_v59 = vsel %vm768_vm2, 0, %v806_v47  ;;  %v814_v61 = vperm.slane %v810_v49, %v3016_v40  ;;  %v733_v50 = vpop.f32.mrf.mxu1 }
 0x17f   : > { %v1126_v57 = vrot.slane %v1125_v51, 4  ;;  %v809_v60 = vsel %vm768_vm2, 0, %v808_v53  ;;  %v1138_v2 = vperm.slane %v1134_v55, %v3016_v40  ;;  %v829_v5 = vsel %vm768_vm2, %v808_v53, %v801_v41 }
 0x180   : > { %v821_v62 = vrot.slane %v820_v54, 4  ;;  %v834_v0 = vrot.slane %v809_v60, 4  ;;  %v1145_v3 = vrot.slane %v1144_v58, 4  ;;  %v833_v14 = vperm.slane %v829_v5, %v3016_v40 }
 0x181   : > { %v1127_v1 = vsel %vm768_vm2, %v1126_v57, %v1119_v56  ;;  %v2694_v49 = vmov 2   ;;  %v2695_v56 = vmov 1  }
 0x182   : > { %v822_v4 = vsel %vm768_vm2, %v821_v62, %v814_v61  ;;  %v1131_v6 = vperm.slane %v1127_v1, %v3028_v63  ;;  %v835_v8 = vsel %vm768_vm2, %v834_v0, %v807_v59  ;;  %v1146_v9 = vsel %vm768_vm2, %v1145_v3, %v1138_v2  ;;  %2301 = vset.pattern.permute.xlu1 %v2694_v49  ;;  %v2313_v1 = vld [vmem:[%s3422_s24] ss:$0 sm:$0xff] }
 0x183   : > { %v826_v7 = vperm.slane %v822_v4, %v3028_v63  ;;  %v839_v10 = vperm.slane %v835_v8, %v3016_v40  ;;  %v1150_v11 = vperm.slane %v1146_v9, %v3028_v63  ;;  %2303 = vset.pattern.permute.xlu2 %v2694_v49  ;;  %2305 = vset.pattern.permute.xlu0 %v2694_v49  ;;  %v2696_v59 = vmov 0  }
 0x184   : > { %v1132_v12 = vrot.slane %v1131_v6, 4  ;;  %v1156_v41 = vshrl.u32 %v1131_v6, 16  ;;  %v734_v4 = vadd.f32 %v2313_v1, %v733_v50 }
 0x185   : > { %v827_v13 = vrot.slane %v826_v7, 4  ;;  %v840_v15 = vrot.slane %v839_v10, 4  ;;  %v1155_v16 = vpack.i.b16 %v1150_v11, %v1131_v6  ;;  %v1151_v18 = vrot.slane %v1150_v11, 4 }
 0x186   : > { %v1133_v17 = vsel %vm768_vm2, 0, %v1132_v12  ;;  %v852_v26 = vshrl.u32 %v826_v7, 16  ;;  %v1157_v37 = vshrl.u32 %v1150_v11, 16  ;;  %v735_v51 = vpop.f32.mrf.mxu1  ;;  %v1345_v12 = vlaneseq }
 0x187   : > { %v841_v19 = vsel %vm768_vm2, %v840_v15, %v833_v14  ;;  %2135 = vmatmul.msk.bf16.vlgmr.msra.gmra.mxu3 %vm1169_vm1, %v1155_v16  ;;  %v1152_v20 = vsel %vm768_vm2, 0, %v1151_v18  ;;  %v1162_v23 = vshrl.u32 %v1133_v17, 16  ;;  %v828_v25 = vsel %vm768_vm2, 0, %v827_v13 }
 0x188   : > { %v845_v21 = vperm.slane %v841_v19, %v3028_v63  ;;  %v1161_v22 = vpack.i.b16 %v1152_v20, %v1133_v17  ;;  %v1163_v24 = vshrl.u32 %v1152_v20, 16  ;;  %v860_v34 = vshrl.u32 %v828_v25, 16 }
 0x189   : > { %v1158_v45 = vpack.i.b16 %v1157_v37, %v1156_v41  ;;  %v1346_v13 = vshrl.u32 %v1345_v12, 7  ;;  %v1350_v14 = vand.u32 127, %v1345_v12 }
 0x18a   : > { %v846_v27 = vrot.slane %v845_v21, 4  ;;  %v850_v28 = vpack.i.b16 %v845_v21, %v826_v7  ;;  %v853_v29 = vshrl.u32 %v845_v21, 16  ;;  %2137 = vmatmul.msk.bf16.vlgmr.msrb.gmra.mxu0 %vm1169_vm1, %v1161_v22  ;;  %v1164_v30 = vpack.i.b16 %v1163_v24, %v1162_v23 }
 0x18b   : > { %v3114_v7 = vpack.c.bf16 %v734_v4, %v734_v4 }
 0x18c   : > { %v847_v31 = vsel %vm768_vm2, 0, %v846_v27  ;;  %v854_v32 = vpack.i.b16 %v853_v29, %v852_v26  ;;  %865 = vst.msk [vmem:[#allocation2] sm:$0xf] %vm864_vm3, %v850_v28  ;;  %2138 = vmatmul.msk.bf16.vlgmr.msrb.gmra.mxu1 %vm1169_vm1, %v1164_v30 }
 0x18d   : > { %v858_v33 = vpack.i.b16 %v847_v31, %v828_v25  ;;  %v861_v35 = vshrl.u32 %v847_v31, 16 }
 0x18e   : > { %866 = vst.msk [vmem:[#allocation2 + $0x4] sm:$0xf] %vm864_vm3, %v854_v32 }
 0x18f   : > { %v862_v36 = vpack.i.b16 %v861_v35, %v860_v34  ;;  %867 = vst.msk [vmem:[#allocation2 + $0x8] sm:$0xf] %vm864_vm3, %v858_v33  ;;  %v1451_v35 = vld [vmem:[%s571_s27] sm:$0x1]  ;;  %s2699_s27 = smov 8  }
 0x190   : > { %vm1452_vm7 = vcmp.eq.s32.totalorder %v1451_v35, 0 }
 0x191   : > { %868 = vst.msk [vmem:[#allocation2 + $0xc] sm:$0xf] %vm864_vm3, %v862_v36 }
 0x193   : > { %v1262_v38 = vld [vmem:[#allocation2] sm:$0xf] }
 0x194   : > { %v1271_v39 = vsel %vm1169_vm1, %v1262_v38, 0 }
 0x195   : > { %1280 = vmatpush.bf16.xpose.msrb.mxu2 %v1271_v39  ;;  %v1263_v42 = vld [vmem:[#allocation2 + $0x4] sm:$0xf] }
 0x196   : > { %v1287_v43 = vsel %vm1169_vm1, %v1263_v42, 0  ;;  %v1264_v44 = vld [vmem:[#allocation2 + $0x8] sm:$0xf] }
 0x197   : > { %1296 = vmatpush.bf16.xpose.msra.mxu3 %v1287_v43  ;;  %v1303_v46 = vsel %vm1169_vm1, %v1264_v44, 0 }
 0x198   : > { %1312 = vmatpush.bf16.xpose.msra.mxu0 %v1303_v46  ;;  %2136 = vmatmul.msk.bf16.vlgmr.msrb.gmra.mxu3 %vm1169_vm1, %v1158_v45  ;;  %v1265_v47 = vld [vmem:[#allocation2 + $0xc] sm:$0xf] }
 0x199   : > { %v1319_v48 = vsel %vm1169_vm1, %v1265_v47, 0  ;;  %v1453_v47 = vsel %vm1452_vm7, 1, %v2696_v59 }
 0x19a   : > { %1328 = vmatpush.bf16.xpose.msra.mxu1 %v1319_v48 }
 0x19c   : > { %2139 = vmatmul.msk.bf16.vlgmr.msrb.gmra.mxu2 %vm1169_vm1, %v1155_v16  ;;  %v1353_v16 = vsub.s32 %v1346_v13, %v1350_v14 }
 0x19e   : > { %vm1358_vm4 = vcmp.eq.s32.totalorder %v1353_v16, 0  ;;  %vm1389_vm5 = vcmp.eq.s32.totalorder %v1353_v16, 1  ;;  %vm1416_vm6 = vcmp.eq.s32.totalorder %v1353_v16, 2 }
 0x19f   : > { %2141 = vmatmul.msk.bf16.vlgmr.msra.gmra.mxu0 %vm1169_vm1, %v1161_v22 }
 0x1a1   : > { %2142 = vmatmul.msk.bf16.vlgmr.msra.gmra.mxu1 %vm1169_vm1, %v1164_v30 }
 0x1a8   : > { %2140 = vmatmul.msk.bf16.vlgmr.msra.gmra.mxu3 %vm1169_vm1, %v1158_v45 }
 0x207   : > { %v1223_v52 = vpop.f32.mrf.mxu0 }
 0x208   : > { %1373 = vperm.xlu1 %2301, %v1223_v52  }
 0x209   : > { %v1242_v53 = vpop.f32.mrf.mxu1 }
 0x20a   : > { %v1185_v54 = vpop.f32.mrf.mxu3  ;;  %1378 = vperm.xlu2 %2303, %v1242_v53  }
 0x20b   : > { %1363 = vperm.xlu0 %2305, %v1185_v54  }
 0x20f   : > { %v1225_v55 = vpop.f32.mrf.mxu0 }
 0x210   : > { %2302 = vset.pattern.permute.xlu1 %v2695_v56 }
 0x211   : > { %v1244_v57 = vpop.f32.mrf.mxu1  ;;  %1401 = vperm.xlu1 %2302, %v1223_v52  }
 0x212   : > { %v1187_v58 = vpop.f32.mrf.mxu3  ;;  %2304 = vset.pattern.permute.xlu2 %v2695_v56 }
 0x213   : > { %1405 = vperm.xlu2 %2304, %v1242_v53   ;;  %2309 = vset.pattern.permute.xlu0 %v2696_v59 }
 0x219   : > { %2307 = vset.pattern.permute.xlu1 %v2694_v49 }
 0x21b   : > { %v1204_v60 = vpop.f32.mrf.mxu3  ;;  %1393 = vperm.xlu2 %2304, %v1185_v54  }
 0x21c   : > { %v1314_v61 = vpop.f32.mrf.mxu0  ;;  %1424 = vperm.xlu0 %2309, %v1204_v60   ;;  %1368 = vperm.xlu1 %2307, %v1204_v60  }
 0x21d   : > { %1336 = vst.msk [vmem:[#allocation4 + $0x10] sm:$0xff] %vm1169_vm1, %v1314_v61 }
 0x21e   : > { %v1330_v62 = vpop.f32.mrf.mxu1 }
 0x21f   : > { %1337 = vst.msk [vmem:[#allocation4 + $0x18] sm:$0xff] %vm1169_vm1, %v1330_v62  ;;  %v1282_v0 = vpop.f32.mrf.mxu2 }
 0x220   : > { %1334 = vst.msk [vmem:[#allocation4] sm:$0xff] %vm1169_vm1, %v1282_v0 }
 0x223   : > { %v1206_v2 = vpop.f32.mrf.mxu3  ;;  %2306 = vset.pattern.permute.xlu2 %v2696_v59 }
 0x224   : > { %v1316_v3 = vpop.f32.mrf.mxu0  ;;  %1428 = vperm.xlu0 %2309, %v1223_v52   ;;  %2308 = vset.pattern.permute.xlu1 %v2695_v56  ;;  %v1356_v31 = vld [vmem:[#allocation4 + $0x10] sm:$0xff]  ;;  %v1454_v52 = vperm.slane %v1453_v47, 0 }
 0x225   : > { %1420 = vperm.xlu2 %2306, %v1185_v54   ;;  %1397 = vperm.xlu1 %2308, %v1204_v60  }
 0x226   : > { %v1332_v5 = vpop.f32.mrf.mxu1  ;;  %v1357_v50 = vld [vmem:[#allocation4 + $0x18] sm:$0xff]  ;;  %vm3138_vm8 = vcmp.eq.s32.totalorder %v1454_v52, 1 }
 0x227   : > { %v1284_v6 = vpop.f32.mrf.mxu2  ;;  %v1354_v19 = vld [vmem:[#allocation4] sm:$0xff] }
 0x228   : > { %v2697_v6 = vmov -1e+30  }
 0x229   : > { %1249 = vst.msk [vmem:[#allocation5 + $0x10] sm:$0xff] %vm1246_vm9, %v2697_v6 }
 0x22a   : > { %1247 = vst.msk [vmem:[#allocation5] sm:$0xff] %vm1246_vm9, %v2697_v6 }
 0x22b   : > { %v1298_v8 = vpop.f32.mrf.mxu3  ;;  %1248 = vst.msk [vmem:[#allocation5 + $0x8] sm:$0xff] %vm1246_vm9, %v2697_v6 }
 0x22c   : > { %1335 = vst.msk [vmem:[#allocation4 + $0x8] sm:$0xff] %vm1169_vm1, %v1298_v8  ;;  %873 = vrot.lane.b32.xlu0 %v3114_v7, %s2689_s15 }
 0x22d   : > { %2310 = vset.pattern.permute.xlu1 %v2696_v59  ;;  %1250 = vst.msk [vmem:[#allocation5 + $0x18] sm:$0xff] %vm1246_vm9, %v2697_v6 }
 0x22e   : > { %1432 = vperm.xlu1 %2310, %v1242_v53  }
 0x230   : > { %v3183_v12 = vld [vmem:[#allocation5 + $0x10] sm:$0xff] }
 0x233   : > { %v1300_v9 = vpop.f32.mrf.mxu3  ;;  %v1355_v37 = vld [vmem:[#allocation4 + $0x8] sm:$0xff] }
 0x264   : > { %v1379_v10 = vpop.permute.xlu2 %1378 }
 0x265   : > { %v1384_v48 = vsel %vm1358_vm4, %v1379_v10, 0.0  ;;  %v2698_v10 = vmov 0.0  }
 0x266   : > { %v1388_v53 = vadd.f32 %v1384_v48, %v1357_v50  ;;  %1252 = vst.msk [vmem:[#allocation6 + $0x8] sm:$0xff] %vm1246_vm9, %v2698_v10 }
 0x267   : > { %1251 = vst.msk [vmem:[#allocation6] sm:$0xff] %vm1246_vm9, %v2698_v10 }
 0x268   : > { %1253 = vst.msk [vmem:[#allocation6 + $0x10] sm:$0xff] %vm1246_vm9, %v2698_v10 }
 0x269   : > { %1254 = vst.msk [vmem:[#allocation6 + $0x18] sm:$0xff] %vm1246_vm9, %v2698_v10 }
 0x26a   : > { %1255 = vst.msk [vmem:[#allocation7] sm:$0xff] %vm1169_vm1, %v2698_v10 }
 0x26b   : > { %1256 = vst.msk [vmem:[#allocation7 + $0x8] sm:$0xff] %vm1169_vm1, %v2698_v10 }
 0x26c   : > { %1257 = vst.msk [vmem:[#allocation7 + $0x10] sm:$0xff] %vm1169_vm1, %v2698_v10 }
 0x26d   : > { %v1406_v11 = vpop.permute.xlu2 %1405  ;;  %1258 = vst.msk [vmem:[#allocation7 + $0x18] sm:$0xff] %vm1169_vm1, %v2698_v10 }
 0x26e   : > { %v1411_v51 = vsel %vm1389_vm5, %v1406_v11, 0.0 }
 0x26f   : > { %v1415_v54 = vadd.f32 %v1411_v51, %v1388_v53 }
 0x275   : > { %v1394_v15 = vpop.permute.xlu2 %1393 }
 0x276   : > { %v1408_v23 = vsel %vm1389_vm5, %v1394_v15, 0.0  ;;  %v3188_v15 = vld [vmem:[#allocation5 + $0x8] sm:$0xff] }
 0x27a   : > { %v1374_v17 = vpop.permute.xlu1 %1373 }
 0x27b   : > { %v1383_v30 = vsel %vm1358_vm4, %v1374_v17, 0.0 }
 0x27c   : > { %v1387_v33 = vadd.f32 %v1383_v30, %v1356_v31 }
 0x27d   : > { %v1364_v18 = vpop.permute.xlu0 %1363 }
 0x27e   : > { %v1381_v20 = vsel %vm1358_vm4, %v1364_v18, 0.0 }
 0x27f   : > { %v1385_v21 = vadd.f32 %v1381_v20, %v1354_v19  ;;  %v1421_v22 = vpop.permute.xlu2 %1420  ;;  %v3203_v20 = vld [vmem:[#allocation5 + $0x18] sm:$0xff] }
 0x280   : > { %v1435_v25 = vsel %vm1416_vm6, %v1421_v22, 0.0 }
 0x281   : > { %v1412_v24 = vadd.f32 %v1408_v23, %v1385_v21 }
 0x283   : > { %v1439_v26 = vadd.f32 %v1435_v25, %v1412_v24  ;;  %v1402_v27 = vpop.permute.xlu1 %1401  ;;  %v3212_v24 = vld [vmem:[#allocation5] sm:$0xff] }
 0x284   : > { %v1410_v32 = vsel %vm1389_vm5, %v1402_v27, 0.0 }
 0x285   : > { %1443 = vst.msk [vmem:[#allocation4] sm:$0xff] %vm1169_vm1, %v1439_v26  ;;  %v1414_v36 = vadd.f32 %v1410_v32, %v1387_v33  ;;  %v880_v32 = vshrl.u32 %v3114_v7, 16 }
 0x28c   : > { %v1447_v5 = vld [vmem:[#allocation4] sm:$0xff] }
 0x28d   : > { %v3166_v8 = vsel %vm3138_vm8, -1e+09, %v1447_v5 }
 0x28e   : > { %v1425_v28 = vpop.permute.xlu0 %1424  ;;  %v1369_v29 = vpop.permute.xlu1 %1368  ;;  %v1464_v9 = vsel %vm1169_vm1, %v3166_v8, -inf }
 0x28f   : > { %v1382_v34 = vsel %vm1358_vm4, %v1369_v29, 0.0  ;;  %v1436_v46 = vsel %vm1416_vm6, %v1425_v28, 0.0 }
 0x290   : > { %v1386_v39 = vadd.f32 %v1382_v34, %v1355_v37 }
 0x296   : > { %v1429_v38 = vpop.permute.xlu0 %1428 }
 0x297   : > { %v1437_v41 = vsel %vm1416_vm6, %v1429_v38, 0.0  ;;  %v1398_v42 = vpop.permute.xlu1 %1397 }
 0x298   : > { %v1441_v43 = vadd.f32 %v1437_v41, %v1414_v36  ;;  %v1409_v44 = vsel %vm1389_vm5, %v1398_v42, 0.0 }
 0x299   : > { %v1413_v45 = vadd.f32 %v1409_v44, %v1386_v39 }
 0x29a   : > { %1445 = vst.msk [vmem:[#allocation4 + $0x10] sm:$0xff] %vm1169_vm1, %v1441_v43 }
 0x29b   : > { %v1440_v49 = vadd.f32 %v1436_v46, %v1413_v45 }
 0x29d   : > { %1444 = vst.msk [vmem:[#allocation4 + $0x8] sm:$0xff] %vm1169_vm1, %v1440_v49 }
 0x29e   : > { %v874_v11 = vpop.permute.xlu0 %873 }
 0x29f   : > { %v886_v29 = vshrl.u32 %v874_v11, 16 }
 0x2a0   : > { %v1433_v55 = vpop.permute.xlu1 %1432 }
 0x2a1   : > { %v1438_v56 = vsel %vm1416_vm6, %v1433_v55, 0.0  ;;  %v1449_v57 = vld [vmem:[#allocation4 + $0x10] sm:$0xff] }
 0x2a2   : > { %v1442_v59 = vadd.f32 %v1438_v56, %v1415_v54  ;;  %v3144_v60 = vsel %vm3138_vm8, -1e+09, %v1449_v57 }
 0x2a3   : > { %v1470_v61 = vsel %vm1169_vm1, %v3144_v60, -inf }
 0x2a4   : > { %1446 = vst.msk [vmem:[#allocation4 + $0x18] sm:$0xff] %vm1169_vm1, %v1442_v59  ;;  %1471 = vmax.xlane.f32.xlu1 %v1470_v61  ;;  %v1448_v62 = vld [vmem:[#allocation4 + $0x8] sm:$0xff] }
 0x2a5   : > { %v3151_v0 = vsel %vm3138_vm8, -1e+09, %v1448_v62 }
 0x2a6   : > { %v1467_v1 = vsel %vm1169_vm1, %v3151_v0, -inf }
 0x2a7   : > { %1468 = vmax.xlane.f32.xlu0 %v1467_v1 }
 0x2ab   : > { %v1450_v2 = vld [vmem:[#allocation4 + $0x18] sm:$0xff] }
 0x2ac   : > { %v3157_v3 = vsel %vm3138_vm8, -1e+09, %v1450_v2 }
 0x2ad   : > { %v1473_v4 = vsel %vm1169_vm1, %v3157_v3, -inf }
 0x2ae   : > { %1474 = vmax.xlane.f32.xlu2 %v1473_v4 }
 0x2b6   : > { %1465 = vmax.xlane.f32.xlu2 %v1464_v9 }
 0x2bd   : > { %875 = vrot.lane.b32.xlu1 %v3114_v7, %s2690_s13  ;;  %s3426_s13 = sld [smem:[#allocation45_spill]] }
 0x2c3   : > { %s1900_s20 = scalar_lea.hbm %s3426_s13, %s2157_s9  ;;  %s2599_s1 = scalar_lea.hbm %s3426_s13, 16 }
 0x2c4   : > { %s1904_s0 = sshll.u32 %s1900_s20, 4  ;;  %s1905_s0 = int_to_ptr.hbm [resolvable:$true] %s1904_s0 }
 0x2c5   : > { %s2593_s22 = sshra.s32 %s1905_s0, 4  ;;  %s2594_s22 = int_to_ptr.hbm [resolvable:$true] %s2593_s22 }
 0x2c6   : > { %s2595_s5 = scalar_lea.hbm %s2594_s22, 8  ;;  %p2600_p8 = scmp.lt.s32.totalorder %s2594_s22, %s3426_s13 }
 0x2c7   : > { %p2596_p1 = scmp.ne.s32.totalorder %s2594_s22, %s2595_s5  ;;  %p2601_p10 = scmp.lt.s32.totalorder %s2599_s1, %s2595_s5 }
 0x2c9   : > { %p2597_p2 = pnand %p2596_p1, %p2861_p7  ;;  %p2602_p13 = por %p2601_p10, %p2600_p8 }
 0x2cb   : > { %p2598_p4 = pneg %p2597_p2 }
 0x2cd   : > { %p2603_p0 = pnand %p2602_p13, %p2598_p4 }
 0x2ce   : > { %871 = vrot.lane.b32.xlu2 %v3114_v7, %s2691_s10 }
 0x317   : > { %v1472_v13 = vpop.xlane.xlu1 %1471 }
 0x318   : > { %v3186_v14 = vmax.f32 %v3183_v12, %v1472_v13 }
 0x31a   : > { %v1482_v16 = vsub.f32 %v3183_v12, %v3186_v14  ;;  %1671 = vst.msk [vmem:[#allocation5 + $0x10] sm:$0xff] %vm1246_vm9, %v3186_v14  ;;  %v1469_v17 = vpop.xlane.xlu0 %1468  ;;  %1504 = vperm.xlu1 %2310, %v3186_v14  }
 0x31b   : > { %v3196_v18 = vmax.f32 %v3188_v15, %v1469_v17 }
 0x31d   : > { %v1481_v19 = vsub.f32 %v3188_v15, %v3196_v18  ;;  %1670 = vst.msk [vmem:[#allocation5 + $0x8] sm:$0xff] %vm1246_vm9, %v3196_v18  ;;  %1499 = vperm.xlu2 %2306, %v3196_v18  }
 0x321   : > { %v1475_v21 = vpop.xlane.xlu2 %1474 }
 0x322   : > { %v3206_v22 = vmax.f32 %v3203_v20, %v1475_v21 }
 0x324   : > { %v1483_v23 = vsub.f32 %v3203_v20, %v3206_v22  ;;  %1672 = vst.msk [vmem:[#allocation5 + $0x18] sm:$0xff] %vm1246_vm9, %v3206_v22  ;;  %v1488_v20 = vmul.f32 1.442695, %v1482_v16 }
 0x329   : > { %v1466_v25 = vpop.xlane.xlu2 %1465 }
 0x32a   : > { %v3215_v26 = vmax.f32 %v3212_v24, %v1466_v25 }
 0x32c   : > { %v1480_v27 = vsub.f32 %v3212_v24, %v3215_v26  ;;  %1669 = vst.msk [vmem:[#allocation5] sm:$0xff] %vm1246_vm9, %v3215_v26  ;;  %1494 = vperm.xlu0 %2309, %v3215_v26  }
 0x32f   : > { %v876_v28 = vpop.permute.xlu1 %875 }
 0x330   : > { %v885_v30 = vpack.i.b16 %v876_v28, %v874_v11  ;;  %v887_v31 = vshrl.u32 %v876_v28, 16 }
 0x331   : > { %v872_v33 = vpop.permute.xlu2 %871 }
 0x332   : > { %v888_v34 = vpack.i.b16 %v887_v31, %v886_v29  ;;  %v898_v35 = vperm.slane %v885_v30, %v3016_v40  ;;  %v879_v36 = vpack.i.b16 %v872_v33, %v3114_v7  ;;  %v881_v37 = vshrl.u32 %v872_v33, 16 }
 0x334   : > { %v899_v38 = vrot.slane %v898_v35, 4  ;;  %v924_v39 = vperm.slane %v888_v34, %v3016_v40  ;;  %v882_v41 = vpack.i.b16 %v881_v37, %v880_v32  ;;  %v893_v42 = vperm.slane %v879_v36, %v3016_v40  ;;  %1509 = vperm.xlu0 %2309, %v3206_v22  }
 0x336   : > { %v925_v43 = vrot.slane %v924_v39, 4  ;;  %v900_v44 = vsel %vm768_vm2, %v899_v38, %v893_v42  ;;  %v901_v45 = vrot.slane %v893_v42, 4  ;;  %v919_v46 = vperm.slane %v882_v41, %v3016_v40 }
 0x337   : > { %v906_v47 = vperm.slane %v900_v44, %v3028_v63 }
 0x338   : > { %v902_v48 = vsel %vm768_vm2, %v898_v35, %v901_v45  ;;  %v926_v7 = vsel %vm768_vm2, %v925_v43, %v919_v46  ;;  %v927_v49 = vrot.slane %v919_v46, 4 }
 0x339   : > { %v910_v50 = vperm.slane %v902_v48, %v3028_v63  ;;  %v932_v51 = vperm.slane %v926_v7, %v3028_v63  ;;  %v911_v53 = vrot.slane %v906_v47, 4 }
 0x33a   : > { %v928_v52 = vsel %vm768_vm2, %v924_v39, %v927_v49 }
 0x33b   : > { %v913_v54 = vrot.slane %v910_v50, 4  ;;  %v936_v55 = vperm.slane %v928_v52, %v3028_v63  ;;  %v937_v57 = vrot.slane %v932_v51, 4  ;;  %v912_v61 = vsel %vm768_vm2, 0, %v911_v53 }
 0x33d   : > { %v914_v56 = vsel %vm768_vm2, 0, %v913_v54  ;;  %v939_v58 = vrot.slane %v936_v55, 4  ;;  %v941_v1 = vsel %vm768_vm2, %v913_v54, %v906_v47  ;;  %v938_v5 = vsel %vm768_vm2, 0, %v937_v57 }
 0x33e   : > { %v946_v59 = vrot.slane %v914_v56, 4  ;;  %v945_v11 = vperm.slane %v941_v1, %v3016_v40 }
 0x33f   : > { %v940_v62 = vsel %vm768_vm2, 0, %v939_v58  ;;  %v960_v9 = vsel %vm768_vm2, %v939_v58, %v932_v51 }
 0x340   : > { %v947_v2 = vsel %vm768_vm2, %v946_v59, %v912_v61  ;;  %v965_v4 = vrot.slane %v940_v62, 4  ;;  %v964_v25 = vperm.slane %v960_v9, %v3016_v40  ;;  %v1484_v62 = vmul.f32 1.442695, %v1480_v27 }
 0x341   : > { %v951_v6 = vperm.slane %v947_v2, %v3016_v40  ;;  %v1486_v9 = vmul.f32 1.442695, %v1481_v19 }
 0x342   : > { %v966_v10 = vsel %vm768_vm2, %v965_v4, %v938_v5 }
 0x343   : > { %v952_v13 = vrot.slane %v951_v6, 4  ;;  %v970_v17 = vperm.slane %v966_v10, %v3016_v40 }
 0x345   : > { %v953_v21 = vsel %vm768_vm2, %v952_v13, %v945_v11  ;;  %v971_v28 = vrot.slane %v970_v17, 4  ;;  %v1490_v11 = vmul.f32 1.442695, %v1483_v23  ;;  %v1525_v23 = vld [vmem:[#allocation6 + $0x8] sm:$0xff] }
 0x346   : > { %v957_v29 = vperm.slane %v953_v21, %v3028_v63 }
 0x347   : > { %v972_v30 = vsel %vm768_vm2, %v971_v28, %v964_v25 }
 0x348   : > { %v958_v31 = vrot.slane %v957_v29, 4  ;;  %v976_v32 = vperm.slane %v972_v30, %v3028_v63  ;;  %v983_v33 = vshrl.u32 %v957_v29, 16 }
 0x34a   : > { %v959_v34 = vsel %vm768_vm2, 0, %v958_v31  ;;  %v977_v35 = vrot.slane %v976_v32, 4  ;;  %v981_v36 = vpack.i.b16 %v976_v32, %v957_v29  ;;  %v984_v37 = vshrl.u32 %v976_v32, 16  ;;  %v1526_v32 = vld [vmem:[#allocation6 + $0x10] sm:$0xff] }
 0x34b   : > { %v991_v42 = vshrl.u32 %v959_v34, 16 }
 0x34c   : > { %v978_v38 = vsel %vm768_vm2, 0, %v977_v35  ;;  %v985_v39 = vpack.i.b16 %v984_v37, %v983_v33  ;;  %995 = vst.msk [vmem:[#allocation3] sm:$0xf] %vm864_vm3, %v981_v36  ;;  %v1524_v36 = vld [vmem:[#allocation6] sm:$0xff] }
 0x34d   : > { %v989_v41 = vpack.i.b16 %v978_v38, %v959_v34  ;;  %v992_v43 = vshrl.u32 %v978_v38, 16 }
 0x34e   : > { %996 = vst.msk [vmem:[#allocation3 + $0x4] sm:$0xf] %vm864_vm3, %v985_v39  ;;  %v1553_v39 = vld [vmem:[#allocation7 + $0x8] sm:$0xff] }
 0x34f   : > { %v993_v44 = vpack.i.b16 %v992_v43, %v991_v42  ;;  %997 = vst.msk [vmem:[#allocation3 + $0x8] sm:$0xf] %vm864_vm3, %v989_v41 }
 0x351   : > { %998 = vst.msk [vmem:[#allocation3 + $0xc] sm:$0xf] %vm864_vm3, %v993_v44 }
 0x353   : > { %v1266_v45 = vld [vmem:[#allocation3] sm:$0xf] }
 0x354   : > { %v1589_v46 = vsel %vm1587_vm10, %v1266_v45, 0 }
 0x355   : > { %1598 = vmatpush.bf16.msra.mxu2 %v1589_v46  ;;  %v1267_v47 = vld [vmem:[#allocation3 + $0x4] sm:$0xf] }
 0x356   : > { %v1608_v48 = vsel %vm1587_vm10, %v1267_v47, 0  ;;  %v1268_v7 = vld [vmem:[#allocation3 + $0x8] sm:$0xf] }
 0x357   : > { %1617 = vmatpush.bf16.msrb.mxu3 %v1608_v48  ;;  %v1627_v49 = vsel %vm1587_vm10, %v1268_v7, 0  ;;  %v1527_v47 = vld [vmem:[#allocation6 + $0x18] sm:$0xff] }
 0x358   : > { %1636 = vmatpush.bf16.msrb.mxu0 %v1627_v49  ;;  %v1269_v50 = vld [vmem:[#allocation3 + $0xc] sm:$0xf] }
 0x359   : > { %v1646_v51 = vsel %vm1587_vm10, %v1269_v50, 0 }
 0x35a   : > { %1655 = vmatpush.bf16.msrb.mxu1 %v1646_v51  ;;  %v1552_v51 = vld [vmem:[#allocation7] sm:$0xff] }
 0x377   : > { %v1500_v52 = vpop.permute.xlu2 %1499 }
 0x378   : > { %v1513_v53 = vsub.f32 %v3151_v0, %v1500_v52 }
 0x37a   : > { %v1518_v54 = vmul.f32 1.442695, %v1513_v53  ;;  %v1554_v53 = vld [vmem:[#allocation7 + $0x10] sm:$0xff] }
 0x37c   : > { %2315 = vpow2.f32 %v1518_v54  ;;  %v1555_v54 = vld [vmem:[#allocation7 + $0x18] sm:$0xff] }
 0x382   : > { %v2316_v55 = vpop.eup %2315 }
 0x383   : > { %v1581_v56 = vpack.c.bf16 %v2316_v55, %v2316_v55  ;;  %v1535_v57 = vsel %vm1169_vm1, %v2316_v55, 0.0 }
 0x384   : > { %1536 = vadd.xlane.f32.xlu1 %v1535_v57 }
 0x385   : > { %2144 = vmatmul.msk.bf16.vlgmr.msrb.gmra.mxu3 %vm1169_vm1, %v1581_v56 }
 0x38c   : > { %v1505_v58 = vpop.permute.xlu1 %1504 }
 0x38d   : > { %v1514_v59 = vsub.f32 %v3144_v60, %v1505_v58 }
 0x38f   : > { %v1520_v61 = vmul.f32 1.442695, %v1514_v59 }
 0x391   : > { %2317 = vpow2.f32 %v1520_v61 }
 0x392   : > { %2319 = vpow2.f32 %v1484_v62 }
 0x397   : > { %v2318_v0 = vpop.eup %2317 }
 0x398   : > { %v1582_v1 = vpack.c.bf16 %v2318_v0, %v2318_v0  ;;  %v1538_v2 = vsel %vm1169_vm1, %v2318_v0, 0.0  ;;  %v2320_v4 = vpop.eup %2319 }
 0x399   : > { %1539 = vadd.xlane.f32.xlu0 %v1538_v2  ;;  %v1528_v38 = vmul.f32 %v2320_v4, %v1524_v36 }
 0x39a   : > { %2145 = vmatmul.msk.bf16.vlgmr.msrb.gmra.mxu0 %vm1169_vm1, %v1582_v1 }
 0x39d   : > { %1558 = vperm.xlu1 %2310, %v2320_v4  }
 0x39e   : > { %v1495_v5 = vpop.permute.xlu0 %1494 }
 0x39f   : > { %v1512_v6 = vsub.f32 %v3166_v8, %v1495_v5 }
 0x3a1   : > { %v1516_v60 = vmul.f32 1.442695, %v1512_v6 }
 0x3a3   : > { %2321 = vpow2.f32 %v1516_v60 }
 0x3a4   : > { %2323 = vpow2.f32 %v1486_v9 }
 0x3a6   : > { %v1510_v24 = vpop.permute.xlu0 %1509 }
 0x3a7   : > { %v1515_v26 = vsub.f32 %v3157_v3, %v1510_v24 }
 0x3a9   : > { %v2322_v27 = vpop.eup %2321  ;;  %v1522_v10 = vmul.f32 1.442695, %v1515_v26 }
 0x3aa   : > { %v1580_v13 = vpack.c.bf16 %v2322_v27, %v2322_v27  ;;  %v1532_v17 = vsel %vm1169_vm1, %v2322_v27, 0.0  ;;  %v2324_v8 = vpop.eup %2323 }
 0x3ab   : > { %2325 = vpow2.f32 %v1522_v10  ;;  %1533 = vadd.xlane.f32.xlu2 %v1532_v17  ;;  %v1529_v21 = vmul.f32 %v2324_v8, %v1525_v23 }
 0x3ac   : > { %2143 = vmatmul.msk.bf16.vlgmr.msra.gmra.mxu2 %vm1169_vm1, %v1580_v13  ;;  %2327 = vpow2.f32 %v1490_v11 }
 0x3ad   : > { %1563 = vperm.xlu0 %2309, %v2324_v8   ;;  %2329 = vpow2.f32 %v1488_v20 }
 0x3b1   : > { %v2326_v15 = vpop.eup %2325 }
 0x3b2   : > { %v1583_v18 = vpack.c.bf16 %v2326_v15, %v2326_v15  ;;  %v1541_v3 = vsel %vm1169_vm1, %v2326_v15, 0.0  ;;  %v2328_v19 = vpop.eup %2327 }
 0x3b3   : > { %1542 = vadd.xlane.f32.xlu2 %v1541_v3  ;;  %v2330_v22 = vpop.eup %2329  ;;  %v1531_v48 = vmul.f32 %v2328_v19, %v1527_v47 }
 0x3b4   : > { %2146 = vmatmul.msk.bf16.vlgmr.msrb.gmra.mxu1 %vm1169_vm1, %v1583_v18  ;;  %v1530_v33 = vmul.f32 %v2330_v22, %v1526_v32 }
 0x3b5   : > { %1573 = vperm.xlu0 %2309, %v2328_v19  }
 0x3cb   : > { %1568 = vperm.xlu2 %2306, %v2330_v22  }
 0x3f7   : > { %v1537_v25 = vpop.xlane.xlu1 %1536 }
 0x3f8   : > { %v1545_v28 = vadd.f32 %v1537_v25, %v1529_v21 }
 0x3fa   : > { %1549 = vst.msk [vmem:[#allocation6 + $0x8] sm:$0xff] %vm1246_vm9, %v1545_v28 }
 0x401   : > { %v1678_v29 = vld [vmem:[#allocation6 + $0x8] sm:$0xff] }
 0x402   : > { %2331 = vrcp.f32 %v1678_v29 }
 0x408   : > { %v2332_v30 = vpop.eup %2331  ;;  %v1619_v31 = vpop.f32.mrf.mxu3 }
 0x409   : > { %1692 = vperm.xlu2 %2306, %v2332_v30  }
 0x40c   : > { %v1540_v34 = vpop.xlane.xlu0 %1539 }
 0x40d   : > { %v1546_v35 = vadd.f32 %v1540_v34, %v1530_v33 }
 0x40f   : > { %1550 = vst.msk [vmem:[#allocation6 + $0x10] sm:$0xff] %vm1246_vm9, %v1546_v35  ;;  %v1559_v52 = vpop.permute.xlu1 %1558 }
 0x410   : > { %v1621_v12 = vpop.f32.mrf.mxu3  ;;  %v1576_v56 = vmul.f32 %v1559_v52, %v1552_v51 }
 0x416   : > { %v1679_v14 = vld [vmem:[#allocation6 + $0x10] sm:$0xff] }
 0x417   : > { %v1638_v16 = vpop.f32.mrf.mxu0  ;;  %2333 = vrcp.f32 %v1679_v14 }
 0x41d   : > { %v2334_v37 = vpop.eup %2333 }
 0x41e   : > { %v1534_v41 = vpop.xlane.xlu2 %1533  ;;  %1697 = vperm.xlu0 %2309, %v2334_v37  }
 0x41f   : > { %v1544_v42 = vadd.f32 %v1534_v41, %v1528_v38  ;;  %v1564_v43 = vpop.permute.xlu0 %1563  ;;  %v1640_v44 = vpop.f32.mrf.mxu0 }
 0x420   : > { %v1577_v45 = vmul.f32 %v1564_v43, %v1553_v39 }
 0x421   : > { %1548 = vst.msk [vmem:[#allocation6] sm:$0xff] %vm1246_vm9, %v1544_v42 }
 0x422   : > { %v1662_v46 = vadd.f32 %v1619_v31, %v1577_v45 }
 0x424   : > { %1666 = vst.msk [vmem:[#allocation7 + $0x8] sm:$0xff] %vm1169_vm1, %v1662_v46 }
 0x426   : > { %v1543_v7 = vpop.xlane.xlu2 %1542 }
 0x427   : > { %v1547_v49 = vadd.f32 %v1543_v7, %v1531_v48  ;;  %v1574_v55 = vpop.permute.xlu0 %1573 }
 0x428   : > { %v1677_v50 = vld [vmem:[#allocation6] sm:$0xff]  ;;  %v1579_v62 = vmul.f32 %v1574_v55, %v1555_v54 }
 0x429   : > { %1551 = vst.msk [vmem:[#allocation6 + $0x18] sm:$0xff] %vm1246_vm9, %v1547_v49  ;;  %2335 = vrcp.f32 %v1677_v50 }
 0x42b   : > { %v1674_v26 = vld [vmem:[#allocation7 + $0x8] sm:$0xff] }
 0x42e   : > { %v1569_v57 = vpop.permute.xlu2 %1568 }
 0x42f   : > { %v2336_v58 = vpop.eup %2335  ;;  %v1578_v59 = vmul.f32 %v1569_v57, %v1554_v53  ;;  %v1600_v61 = vpop.f32.mrf.mxu2 }
 0x430   : > { %v1661_v0 = vadd.f32 %v1600_v61, %v1576_v56  ;;  %1687 = vperm.xlu1 %2310, %v2336_v58   ;;  %v1680_v1 = vld [vmem:[#allocation6 + $0x18] sm:$0xff] }
 0x431   : > { %v1663_v2 = vadd.f32 %v1638_v16, %v1578_v59  ;;  %v1657_v4 = vpop.f32.mrf.mxu1  ;;  %2337 = vrcp.f32 %v1680_v1 }
 0x432   : > { %1665 = vst.msk [vmem:[#allocation7] sm:$0xff] %vm1169_vm1, %v1661_v0  ;;  %v1664_v5 = vadd.f32 %v1657_v4, %v1579_v62 }
 0x433   : > { %1667 = vst.msk [vmem:[#allocation7 + $0x10] sm:$0xff] %vm1169_vm1, %v1663_v2 }
 0x434   : > { %1668 = vst.msk [vmem:[#allocation7 + $0x18] sm:$0xff] %vm1169_vm1, %v1664_v5 }
 0x437   : > { %v2338_v6 = vpop.eup %2337  ;;  %v1602_v60 = vpop.f32.mrf.mxu2 }
 0x438   : > { %1702 = vperm.xlu1 %2310, %v2338_v6  }
 0x439   : > { %v1659_v9 = vpop.f32.mrf.mxu1  ;;  %v1673_v10 = vld [vmem:[#allocation7] sm:$0xff] }
 0x43a   : > { %v1675_v18 = vld [vmem:[#allocation7 + $0x10] sm:$0xff] }
 0x43b   : > { %v1676_v23 = vld [vmem:[#allocation7 + $0x18] sm:$0xff] }
 0x463   : > { %v1693_v24 = vpop.permute.xlu2 %1692 }
 0x464   : > { %v1706_v27 = vmul.f32 %v1693_v24, %v1674_v26 }
 0x466   : > { %v1710_v8 = vpack.c.bf16 %v1706_v27, %v1706_v27 }
 0x468   : > { %v1717_v20 = vshrl.u32 %v1710_v8, 16 }
 0x490   : > { %v1698_v17 = vpop.permute.xlu0 %1697 }
 0x491   : > { %v1707_v3 = vmul.f32 %v1698_v17, %v1675_v18 }
 0x493   : > { %v1711_v25 = vpack.c.bf16 %v1707_v3, %v1707_v3 }
 0x495   : > { %v1722_v32 = vshrl.u32 %v1711_v25, 16 }
 0x4a2   : > { %v1688_v11 = vpop.permute.xlu1 %1687 }
 0x4a3   : > { %v1705_v13 = vmul.f32 %v1688_v11, %v1673_v10 }
 0x4a5   : > { %v1709_v15 = vpack.c.bf16 %v1705_v13, %v1705_v13 }
 0x4a7   : > { %v1716_v19 = vshrl.u32 %v1709_v15, 16  ;;  %v1715_v22 = vpack.i.b16 %v1710_v8, %v1709_v15 }
 0x4a9   : > { %v1718_v28 = vpack.i.b16 %v1717_v20, %v1716_v19  ;;  %v1729_v30 = vperm.slane %v1715_v22, %v3016_v40 }
 0x4aa   : > { %v1703_v21 = vpop.permute.xlu1 %1702 }
 0x4ab   : > { %v1708_v29 = vmul.f32 %v1703_v21, %v1676_v23  ;;  %v1755_v33 = vperm.slane %v1718_v28, %v3016_v40  ;;  %v1737_v12 = vrot.slane %v1729_v30, 4 }
 0x4ad   : > { %v1712_v31 = vpack.c.bf16 %v1708_v29, %v1708_v29  ;;  %v1763_v36 = vrot.slane %v1755_v33, 4  ;;  %v2167_v29 = vld [vmem:[#allocation19 + $0x8] sm:$0xff] }
 0x4af   : > { %v1721_v34 = vpack.i.b16 %v1712_v31, %v1711_v25  ;;  %v1723_v35 = vshrl.u32 %v1712_v31, 16  ;;  %v2166_v31 = vld [vmem:[#allocation19] sm:$0xff] }
 0x4b1   : > { %v1724_v14 = vpack.i.b16 %v1723_v35, %v1722_v32  ;;  %v1734_v16 = vperm.slane %v1721_v34, %v3016_v40  ;;  %v1869_v32 = vsel %vm673_vm0, %v2166_v31, 0 }
 0x4b3   : > { %v1735_v37 = vrot.slane %v1734_v16, 4  ;;  %v1738_v38 = vsel %vm768_vm2, %v1734_v16, %v1737_v12  ;;  %v1760_v39 = vperm.slane %v1724_v14, %v3016_v40 }
 0x4b4   : > { %v1746_v41 = vperm.slane %v1738_v38, %v3028_v63 }
 0x4b5   : > { %v1736_v42 = vsel %vm768_vm2, %v1735_v37, %v1729_v30  ;;  %v1761_v43 = vrot.slane %v1760_v39, 4  ;;  %v1764_v44 = vsel %vm768_vm2, %v1760_v39, %v1763_v36  ;;  %v1872_v30 = vsel %vm673_vm0, %v2167_v29, 0  ;;  %v2314_v36 = vld [vmem:[#allocation20] ss:$0 sm:$0xff] }
 0x4b6   : > { %v1742_v45 = vperm.slane %v1736_v42, %v3028_v63  ;;  %v1749_v46 = vrot.slane %v1746_v41, 4  ;;  %v1772_v47 = vperm.slane %v1764_v44, %v3028_v63  ;;  %1880 = vmatpush.bf16.xpose.msrb.mxu2 %v1872_v30 }
 0x4b7   : > { %v1762_v48 = vsel %vm768_vm2, %v1761_v43, %v1755_v33 }
 0x4b8   : > { %v1747_v7 = vrot.slane %v1742_v45, 4  ;;  %v1750_v49 = vsel %vm768_vm2, 0, %v1749_v46  ;;  %v1768_v50 = vperm.slane %v1762_v48, %v3028_v63  ;;  %v1775_v51 = vrot.slane %v1772_v47, 4 }
 0x4b9   : > { %v1782_v52 = vrot.slane %v1750_v49, 4  ;;  %v1777_v56 = vsel %vm768_vm2, %v1749_v46, %v1742_v45 }
 0x4ba   : > { %v1748_v53 = vsel %vm768_vm2, 0, %v1747_v7  ;;  %v1773_v54 = vrot.slane %v1768_v50, 4  ;;  %v1776_v55 = vsel %vm768_vm2, 0, %v1775_v51  ;;  %v1796_v62 = vsel %vm768_vm2, %v1775_v51, %v1768_v50 }
 0x4bb   : > { %v1783_v57 = vsel %vm768_vm2, %v1782_v52, %v1748_v53  ;;  %v1801_v58 = vrot.slane %v1776_v55, 4  ;;  %v1781_v1 = vperm.slane %v1777_v56, %v3016_v40  ;;  %v1800_v6 = vperm.slane %v1796_v62, %v3016_v40 }
 0x4bc   : > { %v1774_v59 = vsel %vm768_vm2, 0, %v1773_v54  ;;  %v1787_v61 = vperm.slane %v1783_v57, %v3016_v40 }
 0x4bd   : > { %v1802_v0 = vsel %vm768_vm2, %v1801_v58, %v1774_v59 }
 0x4be   : > { %v1788_v2 = vrot.slane %v1787_v61, 4  ;;  %v1806_v4 = vperm.slane %v1802_v0, %v3016_v40  ;;  %1881 = vmatpush.bf16.xpose.msrb.mxu2 %v1869_v32 }
 0x4c0   : > { %v1789_v5 = vsel %vm768_vm2, %v1788_v2, %v1781_v1  ;;  %v1807_v60 = vrot.slane %v1806_v4, 4 }
 0x4c1   : > { %v1793_v9 = vperm.slane %v1789_v5, %v3028_v63 }
 0x4c2   : > { %v1808_v24 = vsel %vm768_vm2, %v1807_v60, %v1800_v6 }
 0x4c3   : > { %v1812_v26 = vperm.slane %v1808_v24, %v3028_v63  ;;  %v1794_v27 = vrot.slane %v1793_v9, 4  ;;  %v1818_v10 = vshrl.u32 %v1793_v9, 16 }
 0x4c5   : > { %v1819_v11 = vshrl.u32 %v1812_v26, 16  ;;  %v1795_v13 = vsel %vm768_vm2, 0, %v1794_v27  ;;  %v1813_v17 = vrot.slane %v1812_v26, 4  ;;  %v1817_v8 = vpack.i.b16 %v1812_v26, %v1793_v9 }
 0x4c6   : > { %v1824_v19 = vshrl.u32 %v1795_v13, 16 }
 0x4c7   : > { %v1820_v15 = vpack.i.b16 %v1819_v11, %v1818_v10  ;;  %v1814_v18 = vsel %vm768_vm2, 0, %v1813_v17 }
 0x4c8   : > { %v1823_v3 = vpack.i.b16 %v1814_v18, %v1795_v13  ;;  %v1825_v40 = vshrl.u32 %v1814_v18, 16 }
 0x4c9   : > { %v1827_v20 = vunpack.c.l.b16 %v1820_v15 }
 0x4ca   : > { %v1831_v22 = vunpack.c.l.b16 %v1823_v3  ;;  %v1826_v23 = vpack.i.b16 %v1825_v40, %v1824_v19 }
 0x4cb   : > { %v1828_v21 = vpack.c.b16 %v1827_v20, %v1827_v20 }
 0x4cc   : > { %v1832_v25 = vpack.c.b16 %v1831_v22, %v1831_v22  ;;  %v1835_v28 = vunpack.c.l.b16 %v1826_v23 }
 0x4cd   : > { %1829 = vrot.lane.b32.xlu2 %v1828_v21, %s2699_s27 }
 0x4ce   : > { %1833 = vrot.lane.b32.xlu0 %v1832_v25, %s2700_s17  ;;  %v1836_v63 = vpack.c.b16 %v1835_v28, %v1835_v28 }
 0x4d0   : > { %1837 = vrot.lane.b32.xlu1 %v1836_v63, %s2701_s14 }
 0x527   : > { %v1830_v33 = vpop.permute.xlu2 %1829 }
 0x528   : > { %v1841_v34 = vsel %vm1169_vm1, %v1817_v8, %v1830_v33 }
 0x540   : > { %v1834_v35 = vpop.permute.xlu0 %1833 }
 0x541   : > { %v1844_v12 = vsel %vm1842_vm11, %v1841_v34, %v1834_v35 }
 0x542   : > { %v1838_v14 = vpop.permute.xlu1 %1837 }
 0x543   : > { %v1847_v16 = vsel %vm1845_vm12, %v1844_v12, %v1838_v14 }
 0x544   : > { %2155 = vmatmul.msk.bf16.vlgmr.msrb.gmra.mxu2 %vm673_vm0, %v1847_v16 }
 0x5c7   : > { %v1883_v37 = vpop.f32.mrf.mxu2 }
 0x5c8   : > { %v1884_v38 = vadd.f32 %v2314_v36, %v1883_v37 }
 0x5ca   : > { %1887 = vst.msk [vmem:[%s648_s25] sm:$0xff] %vm673_vm0, %v1884_v38 }
 0x5cb   : > { %2606 = shalt.err (!%p2603_p0)
}
 0x5cc   : > { %2192 = dma.vmem_to_hbm [thread:$0]  (%p2861_p7), %s1903_s12, 128, %s1905_s0, %s1889_s21  }
 0x5cf   : > { %v1885_v39 = vpop.f32.mrf.mxu2 }
 0x5d0 PF: > { %s3428_s23 = sld [smem:[#allocation30_spill]]  ;;  %p2221_p3 = pnand %p2092_p11, %p2817_p6 }
 0x5d2   : > { %p2222_p5 = pneg %p2221_p3 }
 0x5d6   : > { %s1916_s14 = sand.u32 1, %s3428_s23  }
 0x5d7   : > { %s1917_s6 = scalar_lea.sflag [#allocation10], %s1916_s14 }
 0x5d8   : > { %2656 = dma.done.wait (%p2222_p5), %s1917_s6, 128  }
 0x5d9   : > { %2658 = vsyncadd (%p2222_p5), %s1917_s6, 4294967168  ;;  %s37_s30 = sadd.s32 1, %s2681_s30   ;;  %s3430_s9 = sld [smem:[#allocation31_spill]] }
 0x5da   : > { %p34_p9 = scmp.ge.s32.totalorder %s37_s30, 4   ;;  %s3431_s27 = sld [smem:[#allocation36_spill]] }
 0x5db   : > { %s3432_s18 = sld [smem:[#allocation34_spill]]  ;;  %s3433_s25 = smov %s2665_s26 }
 0x5dc   : > { %s3435_s28 = smov %s2677_s29 }
 0x5dd   :  { %36 = sbr.rel (!%p34_p9) target bundleno = 22 (0x16), region = 178 }
 0x5df   : > { %s3434_s26 = smov %s3430_s9 }
 0x5e1   : > { %s3436_s29 = smov %s3432_s18 }
 0x5e2   :  { %1923 = vsyncpa [#allocation9], 1 }
 0x5e3   :  { %1925 = vsyncpa [#allocation9 + $0x1], 1 }
 0x5e4   :  { %1926 = vsyncpa [#allocation12], 1 }
 0x5e5   :  { %1928 = vsyncpa [#allocation12 + $0x1], 1 }
 0x5e6   :  { %1929 = vsyncpa [#allocation15], 1 }
 0x5e7   :  { %1931 = vsyncpa [#allocation15 + $0x1], 1 }
 0x5e8   :  { %1932 = vsyncpa [#allocation18], 1 }
 0x5e9   :  { %1933 = vsyncpa [#allocation21], 1 }
 0x5ea   :  { %1934 = vsyncpa [#allocation10], 1 }
 0x5eb   :  { %1936 = vsyncpa [#allocation10 + $0x1], 1 }

</bundles_post_ra>
